<compile_context>
chip_gen: v6e
topology: v6e:2x2x1
jax: 0.10.0
libtpu: 0.0.40
codegen_flags: <defaults>
</compile_context>

<pallas_src>
import functools

import jax
import jax.numpy as jnp
from jax.experimental import pallas as pl
from jax.experimental.pallas import tpu as pltpu


def _pool_kernel(x_ref, w_ref, o_ref, *, c_in, c_out, h, w):
    # x_ref: (TB, C_in*H*W)  VMEM, lane-dense
    # w_ref: (C_out, C_in)   SMEM (cheap scalar reads)
    # o_ref: (TB, C_out*H*W) VMEM, lane-dense
    hw = h * w
    h_is_pow2 = (h & (h - 1)) == 0

    for o in range(c_out):
        # --- 1x1 conv for this output channel: VPU broadcast-FMA over tiny C_in.
        # Channel slices are static lane-blocks (start = c*hw, a multiple of 128
        # when hw is), read straight from the VMEM ref (no hoisted copies).
        acc = x_ref[:, 0:hw] * w_ref[o, 0]
        for c in range(1, c_in):
            acc = acc + x_ref[:, c * hw:(c + 1) * hw] * w_ref[o, c]
        # acc: (TB, H*W) f32; flattened lane index l = h_idx * W + w_idx.

        # --- segmented softmax over the H groups (stride-W lane groups).
        # Circular rolls by multiples of W keep every lane in its own w-residue
        # class; rolling by k*W rotates h_idx by k (mod H).
        #
        # Max: doubling tree.  Once the cumulative window covers >= H entries it
        # spans a full h-cycle; wrap-around duplicates are harmless for max, so
        # this is valid for any H.
        m = acc
        window = 1
        while window < h:
            m = jnp.maximum(m, pltpu.roll(m, window * w, 1))
            window *= 2

        e = jnp.exp(acc - m)

        if h_is_pow2:
            # Sum: same log2(H) doubling tree (exact when H is a power of two).
            s = e
            window = 1
            while window < h:
                s = s + pltpu.roll(s, window * w, 1)
                window *= 2
        else:
            # Exact sum for non-power-of-two H: sequential circular accumulation
            # on the lane-dense layout (no reshape / relayout).
            s = e
            for k in range(1, h):
                s = s + pltpu.roll(e, k * w, 1)

        inv = pl.reciprocal(s, approx=False)  # exact EUP reciprocal: rows sum to 1
        o_ref[:, o * hw:(o + 1) * hw] = (e * inv).astype(o_ref.dtype)


def _tpu_vmem_capacity_bytes():
    try:
        return int(pltpu.get_tpu_info().vmem_capacity_bytes)
    except Exception:
        # Conservative fallback: v7x per-TensorCore physical VMEM.
        return 64 * 1024 * 1024


def _num_tensorcores_per_chip():
    try:
        kind = jax.devices()[0].device_kind.lower()
    except Exception:
        return 1
    return 2 if "v7" in kind else 1


def pool_1_to_1_first(x, weight, *, target_step_bytes=4 << 20):
    """x: (B, C_in, H, W), weight: (C_out, C_in, 1, 1). Returns softmax over H of conv1x1(x)."""
    b, c_in, h, w = x.shape
    c_out = weight.shape[0]
    hw = h * w

    # Free HBM-side reshapes: channels folded into the lane dim for input/output.
    x2 = x.reshape(b, c_in * hw)
    w2 = weight.reshape(c_out, c_in)  # squeeze the 1x1 spatial dims

    itemsize = jnp.dtype(x.dtype).itemsize
    # Per batch element: DMA'd block bytes and in-kernel f32 temporaries
    # (acc/m/e/s/roll temps/result: ~8 live (TB, HW) f32 slabs).
    per_batch_block = (c_in + c_out) * hw * itemsize
    per_batch_total = 2 * per_batch_block + 8 * hw * 4  # double-buffered blocks + temps

    vmem_cap = _tpu_vmem_capacity_bytes()
    # Block-sizing budget: stay well inside physical VMEM on every generation
    # (v7x: 64 MiB physical / 32 MiB scoped default; v5e: 16 MiB scoped default).
    vmem_budget = min(vmem_cap // 2, 28 * 1024 * 1024)

    tb_cap = max(1, vmem_budget // max(per_batch_total, 1))
    tb_want = max(1, target_step_bytes // max(per_batch_block, 1))
    tb = max(1, min(b, tb_cap, tb_want))

    # Only force grid >= 2 on 2-TensorCore parts (v7x); on 1-TC v5e/v6e bigger
    # per-step blocks get closer to the HBM roofline.
    if _num_tensorcores_per_chip() >= 2 and b >= 2:
        tb = min(tb, pl.cdiv(b, 2))

    # Prefer a multiple of 8 batches per step (f32 sublane count) when B allows,
    # so the (TB, C*HW) block's sublane dim is unpadded and stores stay unmasked.
    if tb >= 8:
        tb = (tb // 8) * 8

    grid = (pl.cdiv(b, tb),)

    # Explicit scoped-VMEM limit sized to the real footprint (blocks + temporaries),
    # so the heuristic never silently overshoots a generation's default.
    footprint = tb * per_batch_total
    vmem_limit = int(min(max(vmem_cap // 2, 16 * 1024 * 1024),
                         max(footprint + (4 << 20), 16 << 20)))

    kernel = functools.partial(_pool_kernel, c_in=c_in, c_out=c_out, h=h, w=w)

    out2 = pl.pallas_call(
        kernel,
        out_shape=jax.ShapeDtypeStruct((b, c_out * hw), x.dtype),
        grid_spec=pl.GridSpec(
            grid=grid,
            in_specs=[
                pl.BlockSpec((tb, c_in * hw), lambda i: (i, 0)),
                # Tiny grid-invariant weight: whole array in SMEM (scalar reads),
                # no per-step re-DMA of a VMEM tile.
                pl.BlockSpec(memory_space=pltpu.MemorySpace.SMEM),
            ],
            out_specs=pl.BlockSpec((tb, c_out * hw), lambda i: (i, 0)),
        ),
        compiler_params=pltpu.CompilerParams(
            dimension_semantics=("parallel",),
            vmem_limit_bytes=vmem_limit,
        ),
    )(x2, w2)

    return out2.reshape(b, c_out, h, w)


if __name__ == "__main__":
    key = jax.random.PRNGKey(0)
    kx, kw = jax.random.split(key)

    B, C_IN, C_OUT, H, W = 2, 4, 8, 16, 16

    x = jax.random.normal(kx, (B, C_IN, H, W), dtype=jnp.float32)
    # Deterministic Conv2d-style init (kaiming-uniform-ish scale), shape (C_out, C_in, 1, 1).
    fan_in = C_IN * 1 * 1
    bound = 1.0 / jnp.sqrt(jnp.float32(fan_in))
    weight = jax.random.uniform(
        kw, (C_OUT, C_IN, 1, 1), dtype=jnp.float32, minval=-bound, maxval=bound
    )

    out = jax.block_until_ready(pool_1_to_1_first(x, weight))

    # Pure-JAX reference: 1x1 conv (no bias) + softmax over dim=2 (H).
    conv = jnp.einsum("oc,bchw->bohw", weight.reshape(C_OUT, C_IN), x)
    ref = jax.nn.softmax(conv, axis=2)

    assert out.shape == (B, C_OUT, H, W)
    assert bool(jnp.allclose(out, ref, atol=1e-4, rtol=1e-4))
    assert bool(jnp.allclose(jnp.sum(out, axis=2), 1.0, atol=1e-4))

    print("KERNEL_OK")
</pallas_src>

<mosaic_0001>
module attributes {stable_mosaic.version = 11 : i64} {
  func.func @_pool_kernel(%arg0: i32, %arg1: memref<2x1024xf32, #tpu.memory_space<vmem>>, %arg2: memref<8x4xf32, #tpu.memory_space<smem>>, %arg3: memref<2x2048xf32, #tpu.memory_space<vmem>>) attributes {dimension_semantics = [#tpu.dimension_semantics<parallel>], iteration_bounds = array<i64: 1>, scalar_prefetch = 0 : i64, scratch_operands = 0 : i64, tpu.core_type = #tpu.core_type<tc>, window_params = [{transform_indices = @transform_0, window_bounds = array<i64: 2, 1024>}, {transform_indices = @transform_1, window_bounds = array<i64: 8, 4>}, {transform_indices = @transform_2, window_bounds = array<i64: 2, 2048>}]} {
    %c0 = arith.constant 0 : index
    %c0_0 = arith.constant 0 : index
    %0 = vector.load %arg1[%c0, %c0_0] : memref<2x1024xf32, #tpu.memory_space<vmem>>, vector<2x256xf32>
    %c0_1 = arith.constant 0 : index
    %c0_2 = arith.constant 0 : index
    %1 = memref.load %arg2[%c0_1, %c0_2] : memref<8x4xf32, #tpu.memory_space<smem>>
    %2 = vector.broadcast %1 : f32 to vector<2x256xf32>
    %3 = arith.mulf %0, %2 : vector<2x256xf32>
    %c0_3 = arith.constant 0 : index
    %c256 = arith.constant 256 : index
    %4 = vector.load %arg1[%c0_3, %c256] : memref<2x1024xf32, #tpu.memory_space<vmem>>, vector<2x256xf32>
    %c0_4 = arith.constant 0 : index
    %c1 = arith.constant 1 : index
    %5 = memref.load %arg2[%c0_4, %c1] : memref<8x4xf32, #tpu.memory_space<smem>>
    %6 = vector.broadcast %5 : f32 to vector<2x256xf32>
    %7 = arith.mulf %4, %6 : vector<2x256xf32>
    %8 = arith.addf %3, %7 : vector<2x256xf32>
    %c0_5 = arith.constant 0 : index
    %c512 = arith.constant 512 : index
    %9 = vector.load %arg1[%c0_5, %c512] : memref<2x1024xf32, #tpu.memory_space<vmem>>, vector<2x256xf32>
    %c0_6 = arith.constant 0 : index
    %c2 = arith.constant 2 : index
    %10 = memref.load %arg2[%c0_6, %c2] : memref<8x4xf32, #tpu.memory_space<smem>>
    %11 = vector.broadcast %10 : f32 to vector<2x256xf32>
    %12 = arith.mulf %9, %11 : vector<2x256xf32>
    %13 = arith.addf %8, %12 : vector<2x256xf32>
    %c0_7 = arith.constant 0 : index
    %c768 = arith.constant 768 : index
    %14 = vector.load %arg1[%c0_7, %c768] : memref<2x1024xf32, #tpu.memory_space<vmem>>, vector<2x256xf32>
    %c0_8 = arith.constant 0 : index
    %c3 = arith.constant 3 : index
    %15 = memref.load %arg2[%c0_8, %c3] : memref<8x4xf32, #tpu.memory_space<smem>>
    %16 = vector.broadcast %15 : f32 to vector<2x256xf32>
    %17 = arith.mulf %14, %16 : vector<2x256xf32>
    %18 = arith.addf %13, %17 : vector<2x256xf32>
    %c16_i32 = arith.constant 16 : i32
    %19 = tpu.dynamic_rotate %18 by %c16_i32 dim 1 : vector<2x256xf32>, i32 -> vector<2x256xf32>
    %20 = arith.maximumf %18, %19 : vector<2x256xf32>
    %c32_i32 = arith.constant 32 : i32
    %21 = tpu.dynamic_rotate %20 by %c32_i32 dim 1 : vector<2x256xf32>, i32 -> vector<2x256xf32>
    %22 = arith.maximumf %20, %21 : vector<2x256xf32>
    %c64_i32 = arith.constant 64 : i32
    %23 = tpu.dynamic_rotate %22 by %c64_i32 dim 1 : vector<2x256xf32>, i32 -> vector<2x256xf32>
    %24 = arith.maximumf %22, %23 : vector<2x256xf32>
    %c128_i32 = arith.constant 128 : i32
    %25 = tpu.dynamic_rotate %24 by %c128_i32 dim 1 : vector<2x256xf32>, i32 -> vector<2x256xf32>
    %26 = arith.maximumf %24, %25 : vector<2x256xf32>
    %27 = arith.subf %18, %26 : vector<2x256xf32>
    %28 = math.exp %27 : vector<2x256xf32>
    %c16_i32_9 = arith.constant 16 : i32
    %29 = tpu.dynamic_rotate %28 by %c16_i32_9 dim 1 : vector<2x256xf32>, i32 -> vector<2x256xf32>
    %30 = arith.addf %28, %29 : vector<2x256xf32>
    %c32_i32_10 = arith.constant 32 : i32
    %31 = tpu.dynamic_rotate %30 by %c32_i32_10 dim 1 : vector<2x256xf32>, i32 -> vector<2x256xf32>
    %32 = arith.addf %30, %31 : vector<2x256xf32>
    %c64_i32_11 = arith.constant 64 : i32
    %33 = tpu.dynamic_rotate %32 by %c64_i32_11 dim 1 : vector<2x256xf32>, i32 -> vector<2x256xf32>
    %34 = arith.addf %32, %33 : vector<2x256xf32>
    %c128_i32_12 = arith.constant 128 : i32
    %35 = tpu.dynamic_rotate %34 by %c128_i32_12 dim 1 : vector<2x256xf32>, i32 -> vector<2x256xf32>
    %36 = arith.addf %34, %35 : vector<2x256xf32>
    %37 = tpu.reciprocal %36 : vector<2x256xf32> -> vector<2x256xf32>
    %38 = arith.mulf %28, %37 : vector<2x256xf32>
    %c0_13 = arith.constant 0 : index
    %c0_14 = arith.constant 0 : index
    %39 = vector.load %arg3[%c0_13, %c0_14] : memref<2x2048xf32, #tpu.memory_space<vmem>>, vector<2x256xf32>
    tpu.vector_store %arg3[%c0_13, %c0_14], %38 {strides = array<i32>} : memref<2x2048xf32, #tpu.memory_space<vmem>>, vector<2x256xf32>,
    %c0_15 = arith.constant 0 : index
    %c0_16 = arith.constant 0 : index
    %40 = vector.load %arg1[%c0_15, %c0_16] : memref<2x1024xf32, #tpu.memory_space<vmem>>, vector<2x256xf32>
    %c1_17 = arith.constant 1 : index
    %c0_18 = arith.constant 0 : index
    %41 = memref.load %arg2[%c1_17, %c0_18] : memref<8x4xf32, #tpu.memory_space<smem>>
    %42 = vector.broadcast %41 : f32 to vector<2x256xf32>
    %43 = arith.mulf %40, %42 : vector<2x256xf32>
    %c0_19 = arith.constant 0 : index
    %c256_20 = arith.constant 256 : index
    %44 = vector.load %arg1[%c0_19, %c256_20] : memref<2x1024xf32, #tpu.memory_space<vmem>>, vector<2x256xf32>
    %c1_21 = arith.constant 1 : index
    %c1_22 = arith.constant 1 : index
    %45 = memref.load %arg2[%c1_21, %c1_22] : memref<8x4xf32, #tpu.memory_space<smem>>
    %46 = vector.broadcast %45 : f32 to vector<2x256xf32>
    %47 = arith.mulf %44, %46 : vector<2x256xf32>
    %48 = arith.addf %43, %47 : vector<2x256xf32>
    %c0_23 = arith.constant 0 : index
    %c512_24 = arith.constant 512 : index
    %49 = vector.load %arg1[%c0_23, %c512_24] : memref<2x1024xf32, #tpu.memory_space<vmem>>, vector<2x256xf32>
    %c1_25 = arith.constant 1 : index
    %c2_26 = arith.constant 2 : index
    %50 = memref.load %arg2[%c1_25, %c2_26] : memref<8x4xf32, #tpu.memory_space<smem>>
    %51 = vector.broadcast %50 : f32 to vector<2x256xf32>
    %52 = arith.mulf %49, %51 : vector<2x256xf32>
    %53 = arith.addf %48, %52 : vector<2x256xf32>
    %c0_27 = arith.constant 0 : index
    %c768_28 = arith.constant 768 : index
    %54 = vector.load %arg1[%c0_27, %c768_28] : memref<2x1024xf32, #tpu.memory_space<vmem>>, vector<2x256xf32>
    %c1_29 = arith.constant 1 : index
    %c3_30 = arith.constant 3 : index
    %55 = memref.load %arg2[%c1_29, %c3_30] : memref<8x4xf32, #tpu.memory_space<smem>>
    %56 = vector.broadcast %55 : f32 to vector<2x256xf32>
    %57 = arith.mulf %54, %56 : vector<2x256xf32>
    %58 = arith.addf %53, %57 : vector<2x256xf32>
    %c16_i32_31 = arith.constant 16 : i32
    %59 = tpu.dynamic_rotate %58 by %c16_i32_31 dim 1 : vector<2x256xf32>, i32 -> vector<2x256xf32>
    %60 = arith.maximumf %58, %59 : vector<2x256xf32>
    %c32_i32_32 = arith.constant 32 : i32
    %61 = tpu.dynamic_rotate %60 by %c32_i32_32 dim 1 : vector<2x256xf32>, i32 -> vector<2x256xf32>
    %62 = arith.maximumf %60, %61 : vector<2x256xf32>
    %c64_i32_33 = arith.constant 64 : i32
    %63 = tpu.dynamic_rotate %62 by %c64_i32_33 dim 1 : vector<2x256xf32>, i32 -> vector<2x256xf32>
    %64 = arith.maximumf %62, %63 : vector<2x256xf32>
    %c128_i32_34 = arith.constant 128 : i32
    %65 = tpu.dynamic_rotate %64 by %c128_i32_34 dim 1 : vector<2x256xf32>, i32 -> vector<2x256xf32>
    %66 = arith.maximumf %64, %65 : vector<2x256xf32>
    %67 = arith.subf %58, %66 : vector<2x256xf32>
    %68 = math.exp %67 : vector<2x256xf32>
    %c16_i32_35 = arith.constant 16 : i32
    %69 = tpu.dynamic_rotate %68 by %c16_i32_35 dim 1 : vector<2x256xf32>, i32 -> vector<2x256xf32>
    %70 = arith.addf %68, %69 : vector<2x256xf32>
    %c32_i32_36 = arith.constant 32 : i32
    %71 = tpu.dynamic_rotate %70 by %c32_i32_36 dim 1 : vector<2x256xf32>, i32 -> vector<2x256xf32>
    %72 = arith.addf %70, %71 : vector<2x256xf32>
    %c64_i32_37 = arith.constant 64 : i32
    %73 = tpu.dynamic_rotate %72 by %c64_i32_37 dim 1 : vector<2x256xf32>, i32 -> vector<2x256xf32>
    %74 = arith.addf %72, %73 : vector<2x256xf32>
    %c128_i32_38 = arith.constant 128 : i32
    %75 = tpu.dynamic_rotate %74 by %c128_i32_38 dim 1 : vector<2x256xf32>, i32 -> vector<2x256xf32>
    %76 = arith.addf %74, %75 : vector<2x256xf32>
    %77 = tpu.reciprocal %76 : vector<2x256xf32> -> vector<2x256xf32>
    %78 = arith.mulf %68, %77 : vector<2x256xf32>
    %c0_39 = arith.constant 0 : index
    %c256_40 = arith.constant 256 : index
    %79 = vector.load %arg3[%c0_39, %c256_40] : memref<2x2048xf32, #tpu.memory_space<vmem>>, vector<2x256xf32>
    tpu.vector_store %arg3[%c0_39, %c256_40], %78 {strides = array<i32>} : memref<2x2048xf32, #tpu.memory_space<vmem>>, vector<2x256xf32>,
    %c0_41 = arith.constant 0 : index
    %c0_42 = arith.constant 0 : index
    %80 = vector.load %arg1[%c0_41, %c0_42] : memref<2x1024xf32, #tpu.memory_space<vmem>>, vector<2x256xf32>
    %c2_43 = arith.constant 2 : index
    %c0_44 = arith.constant 0 : index
    %81 = memref.load %arg2[%c2_43, %c0_44] : memref<8x4xf32, #tpu.memory_space<smem>>
    %82 = vector.broadcast %81 : f32 to vector<2x256xf32>
    %83 = arith.mulf %80, %82 : vector<2x256xf32>
    %c0_45 = arith.constant 0 : index
    %c256_46 = arith.constant 256 : index
    %84 = vector.load %arg1[%c0_45, %c256_46] : memref<2x1024xf32, #tpu.memory_space<vmem>>, vector<2x256xf32>
    %c2_47 = arith.constant 2 : index
    %c1_48 = arith.constant 1 : index
    %85 = memref.load %arg2[%c2_47, %c1_48] : memref<8x4xf32, #tpu.memory_space<smem>>
    %86 = vector.broadcast %85 : f32 to vector<2x256xf32>
    %87 = arith.mulf %84, %86 : vector<2x256xf32>
    %88 = arith.addf %83, %87 : vector<2x256xf32>
    %c0_49 = arith.constant 0 : index
    %c512_50 = arith.constant 512 : index
    %89 = vector.load %arg1[%c0_49, %c512_50] : memref<2x1024xf32, #tpu.memory_space<vmem>>, vector<2x256xf32>
    %c2_51 = arith.constant 2 : index
    %c2_52 = arith.constant 2 : index
    %90 = memref.load %arg2[%c2_51, %c2_52] : memref<8x4xf32, #tpu.memory_space<smem>>
    %91 = vector.broadcast %90 : f32 to vector<2x256xf32>
    %92 = arith.mulf %89, %91 : vector<2x256xf32>
    %93 = arith.addf %88, %92 : vector<2x256xf32>
    %c0_53 = arith.constant 0 : index
    %c768_54 = arith.constant 768 : index
    %94 = vector.load %arg1[%c0_53, %c768_54] : memref<2x1024xf32, #tpu.memory_space<vmem>>, vector<2x256xf32>
    %c2_55 = arith.constant 2 : index
    %c3_56 = arith.constant 3 : index
    %95 = memref.load %arg2[%c2_55, %c3_56] : memref<8x4xf32, #tpu.memory_space<smem>>
    %96 = vector.broadcast %95 : f32 to vector<2x256xf32>
    %97 = arith.mulf %94, %96 : vector<2x256xf32>
    %98 = arith.addf %93, %97 : vector<2x256xf32>
    %c16_i32_57 = arith.constant 16 : i32
    %99 = tpu.dynamic_rotate %98 by %c16_i32_57 dim 1 : vector<2x256xf32>, i32 -> vector<2x256xf32>
    %100 = arith.maximumf %98, %99 : vector<2x256xf32>
    %c32_i32_58 = arith.constant 32 : i32
    %101 = tpu.dynamic_rotate %100 by %c32_i32_58 dim 1 : vector<2x256xf32>, i32 -> vector<2x256xf32>
    %102 = arith.maximumf %100, %101 : vector<2x256xf32>
    %c64_i32_59 = arith.constant 64 : i32
    %103 = tpu.dynamic_rotate %102 by %c64_i32_59 dim 1 : vector<2x256xf32>, i32 -> vector<2x256xf32>
    %104 = arith.maximumf %102, %103 : vector<2x256xf32>
    %c128_i32_60 = arith.constant 128 : i32
    %105 = tpu.dynamic_rotate %104 by %c128_i32_60 dim 1 : vector<2x256xf32>, i32 -> vector<2x256xf32>
    %106 = arith.maximumf %104, %105 : vector<2x256xf32>
    %107 = arith.subf %98, %106 : vector<2x256xf32>
    %108 = math.exp %107 : vector<2x256xf32>
    %c16_i32_61 = arith.constant 16 : i32
    %109 = tpu.dynamic_rotate %108 by %c16_i32_61 dim 1 : vector<2x256xf32>, i32 -> vector<2x256xf32>
    %110 = arith.addf %108, %109 : vector<2x256xf32>
    %c32_i32_62 = arith.constant 32 : i32
    %111 = tpu.dynamic_rotate %110 by %c32_i32_62 dim 1 : vector<2x256xf32>, i32 -> vector<2x256xf32>
    %112 = arith.addf %110, %111 : vector<2x256xf32>
    %c64_i32_63 = arith.constant 64 : i32
    %113 = tpu.dynamic_rotate %112 by %c64_i32_63 dim 1 : vector<2x256xf32>, i32 -> vector<2x256xf32>
    %114 = arith.addf %112, %113 : vector<2x256xf32>
    %c128_i32_64 = arith.constant 128 : i32
    %115 = tpu.dynamic_rotate %114 by %c128_i32_64 dim 1 : vector<2x256xf32>, i32 -> vector<2x256xf32>
    %116 = arith.addf %114, %115 : vector<2x256xf32>
    %117 = tpu.reciprocal %116 : vector<2x256xf32> -> vector<2x256xf32>
    %118 = arith.mulf %108, %117 : vector<2x256xf32>
    %c0_65 = arith.constant 0 : index
    %c512_66 = arith.constant 512 : index
    %119 = vector.load %arg3[%c0_65, %c512_66] : memref<2x2048xf32, #tpu.memory_space<vmem>>, vector<2x256xf32>
    tpu.vector_store %arg3[%c0_65, %c512_66], %118 {strides = array<i32>} : memref<2x2048xf32, #tpu.memory_space<vmem>>, vector<2x256xf32>,
    %c0_67 = arith.constant 0 : index
    %c0_68 = arith.constant 0 : index
    %120 = vector.load %arg1[%c0_67, %c0_68] : memref<2x1024xf32, #tpu.memory_space<vmem>>, vector<2x256xf32>
    %c3_69 = arith.constant 3 : index
    %c0_70 = arith.constant 0 : index
    %121 = memref.load %arg2[%c3_69, %c0_70] : memref<8x4xf32, #tpu.memory_space<smem>>
    %122 = vector.broadcast %121 : f32 to vector<2x256xf32>
    %123 = arith.mulf %120, %122 : vector<2x256xf32>
    %c0_71 = arith.constant 0 : index
    %c256_72 = arith.constant 256 : index
    %124 = vector.load %arg1[%c0_71, %c256_72] : memref<2x1024xf32, #tpu.memory_space<vmem>>, vector<2x256xf32>
    %c3_73 = arith.constant 3 : index
    %c1_74 = arith.constant 1 : index
    %125 = memref.load %arg2[%c3_73, %c1_74] : memref<8x4xf32, #tpu.memory_space<smem>>
    %126 = vector.broadcast %125 : f32 to vector<2x256xf32>
    %127 = arith.mulf %124, %126 : vector<2x256xf32>
    %128 = arith.addf %123, %127 : vector<2x256xf32>
    %c0_75 = arith.constant 0 : index
    %c512_76 = arith.constant 512 : index
    %129 = vector.load %arg1[%c0_75, %c512_76] : memref<2x1024xf32, #tpu.memory_space<vmem>>, vector<2x256xf32>
    %c3_77 = arith.constant 3 : index
    %c2_78 = arith.constant 2 : index
    %130 = memref.load %arg2[%c3_77, %c2_78] : memref<8x4xf32, #tpu.memory_space<smem>>
    %131 = vector.broadcast %130 : f32 to vector<2x256xf32>
    %132 = arith.mulf %129, %131 : vector<2x256xf32>
    %133 = arith.addf %128, %132 : vector<2x256xf32>
    %c0_79 = arith.constant 0 : index
    %c768_80 = arith.constant 768 : index
    %134 = vector.load %arg1[%c0_79, %c768_80] : memref<2x1024xf32, #tpu.memory_space<vmem>>, vector<2x256xf32>
    %c3_81 = arith.constant 3 : index
    %c3_82 = arith.constant 3 : index
    %135 = memref.load %arg2[%c3_81, %c3_82] : memref<8x4xf32, #tpu.memory_space<smem>>
    %136 = vector.broadcast %135 : f32 to vector<2x256xf32>
    %137 = arith.mulf %134, %136 : vector<2x256xf32>
    %138 = arith.addf %133, %137 : vector<2x256xf32>
    %c16_i32_83 = arith.constant 16 : i32
    %139 = tpu.dynamic_rotate %138 by %c16_i32_83 dim 1 : vector<2x256xf32>, i32 -> vector<2x256xf32>
    %140 = arith.maximumf %138, %139 : vector<2x256xf32>
    %c32_i32_84 = arith.constant 32 : i32
    %141 = tpu.dynamic_rotate %140 by %c32_i32_84 dim 1 : vector<2x256xf32>, i32 -> vector<2x256xf32>
    %142 = arith.maximumf %140, %141 : vector<2x256xf32>
    %c64_i32_85 = arith.constant 64 : i32
    %143 = tpu.dynamic_rotate %142 by %c64_i32_85 dim 1 : vector<2x256xf32>, i32 -> vector<2x256xf32>
    %144 = arith.maximumf %142, %143 : vector<2x256xf32>
    %c128_i32_86 = arith.constant 128 : i32
    %145 = tpu.dynamic_rotate %144 by %c128_i32_86 dim 1 : vector<2x256xf32>, i32 -> vector<2x256xf32>
    %146 = arith.maximumf %144, %145 : vector<2x256xf32>
    %147 = arith.subf %138, %146 : vector<2x256xf32>
    %148 = math.exp %147 : vector<2x256xf32>
    %c16_i32_87 = arith.constant 16 : i32
    %149 = tpu.dynamic_rotate %148 by %c16_i32_87 dim 1 : vector<2x256xf32>, i32 -> vector<2x256xf32>
    %150 = arith.addf %148, %149 : vector<2x256xf32>
    %c32_i32_88 = arith.constant 32 : i32
    %151 = tpu.dynamic_rotate %150 by %c32_i32_88 dim 1 : vector<2x256xf32>, i32 -> vector<2x256xf32>
    %152 = arith.addf %150, %151 : vector<2x256xf32>
    %c64_i32_89 = arith.constant 64 : i32
    %153 = tpu.dynamic_rotate %152 by %c64_i32_89 dim 1 : vector<2x256xf32>, i32 -> vector<2x256xf32>
    %154 = arith.addf %152, %153 : vector<2x256xf32>
    %c128_i32_90 = arith.constant 128 : i32
    %155 = tpu.dynamic_rotate %154 by %c128_i32_90 dim 1 : vector<2x256xf32>, i32 -> vector<2x256xf32>
    %156 = arith.addf %154, %155 : vector<2x256xf32>
    %157 = tpu.reciprocal %156 : vector<2x256xf32> -> vector<2x256xf32>
    %158 = arith.mulf %148, %157 : vector<2x256xf32>
    %c0_91 = arith.constant 0 : index
    %c768_92 = arith.constant 768 : index
    %159 = vector.load %arg3[%c0_91, %c768_92] : memref<2x2048xf32, #tpu.memory_space<vmem>>, vector<2x256xf32>
    tpu.vector_store %arg3[%c0_91, %c768_92], %158 {strides = array<i32>} : memref<2x2048xf32, #tpu.memory_space<vmem>>, vector<2x256xf32>,
    %c0_93 = arith.constant 0 : index
    %c0_94 = arith.constant 0 : index
    %160 = vector.load %arg1[%c0_93, %c0_94] : memref<2x1024xf32, #tpu.memory_space<vmem>>, vector<2x256xf32>
    %c4 = arith.constant 4 : index
    %c0_95 = arith.constant 0 : index
    %161 = memref.load %arg2[%c4, %c0_95] : memref<8x4xf32, #tpu.memory_space<smem>>
    %162 = vector.broadcast %161 : f32 to vector<2x256xf32>
    %163 = arith.mulf %160, %162 : vector<2x256xf32>
    %c0_96 = arith.constant 0 : index
    %c256_97 = arith.constant 256 : index
    %164 = vector.load %arg1[%c0_96, %c256_97] : memref<2x1024xf32, #tpu.memory_space<vmem>>, vector<2x256xf32>
    %c4_98 = arith.constant 4 : index
    %c1_99 = arith.constant 1 : index
    %165 = memref.load %arg2[%c4_98, %c1_99] : memref<8x4xf32, #tpu.memory_space<smem>>
    %166 = vector.broadcast %165 : f32 to vector<2x256xf32>
    %167 = arith.mulf %164, %166 : vector<2x256xf32>
    %168 = arith.addf %163, %167 : vector<2x256xf32>
    %c0_100 = arith.constant 0 : index
    %c512_101 = arith.constant 512 : index
    %169 = vector.load %arg1[%c0_100, %c512_101] : memref<2x1024xf32, #tpu.memory_space<vmem>>, vector<2x256xf32>
    %c4_102 = arith.constant 4 : index
    %c2_103 = arith.constant 2 : index
    %170 = memref.load %arg2[%c4_102, %c2_103] : memref<8x4xf32, #tpu.memory_space<smem>>
    %171 = vector.broadcast %170 : f32 to vector<2x256xf32>
    %172 = arith.mulf %169, %171 : vector<2x256xf32>
    %173 = arith.addf %168, %172 : vector<2x256xf32>
    %c0_104 = arith.constant 0 : index
    %c768_105 = arith.constant 768 : index
    %174 = vector.load %arg1[%c0_104, %c768_105] : memref<2x1024xf32, #tpu.memory_space<vmem>>, vector<2x256xf32>
    %c4_106 = arith.constant 4 : index
    %c3_107 = arith.constant 3 : index
    %175 = memref.load %arg2[%c4_106, %c3_107] : memref<8x4xf32, #tpu.memory_space<smem>>
    %176 = vector.broadcast %175 : f32 to vector<2x256xf32>
    %177 = arith.mulf %174, %176 : vector<2x256xf32>
    %178 = arith.addf %173, %177 : vector<2x256xf32>
    %c16_i32_108 = arith.constant 16 : i32
    %179 = tpu.dynamic_rotate %178 by %c16_i32_108 dim 1 : vector<2x256xf32>, i32 -> vector<2x256xf32>
    %180 = arith.maximumf %178, %179 : vector<2x256xf32>
    %c32_i32_109 = arith.constant 32 : i32
    %181 = tpu.dynamic_rotate %180 by %c32_i32_109 dim 1 : vector<2x256xf32>, i32 -> vector<2x256xf32>
    %182 = arith.maximumf %180, %181 : vector<2x256xf32>
    %c64_i32_110 = arith.constant 64 : i32
    %183 = tpu.dynamic_rotate %182 by %c64_i32_110 dim 1 : vector<2x256xf32>, i32 -> vector<2x256xf32>
    %184 = arith.maximumf %182, %183 : vector<2x256xf32>
    %c128_i32_111 = arith.constant 128 : i32
    %185 = tpu.dynamic_rotate %184 by %c128_i32_111 dim 1 : vector<2x256xf32>, i32 -> vector<2x256xf32>
    %186 = arith.maximumf %184, %185 : vector<2x256xf32>
    %187 = arith.subf %178, %186 : vector<2x256xf32>
    %188 = math.exp %187 : vector<2x256xf32>
    %c16_i32_112 = arith.constant 16 : i32
    %189 = tpu.dynamic_rotate %188 by %c16_i32_112 dim 1 : vector<2x256xf32>, i32 -> vector<2x256xf32>
    %190 = arith.addf %188, %189 : vector<2x256xf32>
    %c32_i32_113 = arith.constant 32 : i32
    %191 = tpu.dynamic_rotate %190 by %c32_i32_113 dim 1 : vector<2x256xf32>, i32 -> vector<2x256xf32>
    %192 = arith.addf %190, %191 : vector<2x256xf32>
    %c64_i32_114 = arith.constant 64 : i32
    %193 = tpu.dynamic_rotate %192 by %c64_i32_114 dim 1 : vector<2x256xf32>, i32 -> vector<2x256xf32>
    %194 = arith.addf %192, %193 : vector<2x256xf32>
    %c128_i32_115 = arith.constant 128 : i32
    %195 = tpu.dynamic_rotate %194 by %c128_i32_115 dim 1 : vector<2x256xf32>, i32 -> vector<2x256xf32>
    %196 = arith.addf %194, %195 : vector<2x256xf32>
    %197 = tpu.reciprocal %196 : vector<2x256xf32> -> vector<2x256xf32>
    %198 = arith.mulf %188, %197 : vector<2x256xf32>
    %c0_116 = arith.constant 0 : index
    %c1024 = arith.constant 1024 : index
    %199 = vector.load %arg3[%c0_116, %c1024] : memref<2x2048xf32, #tpu.memory_space<vmem>>, vector<2x256xf32>
    tpu.vector_store %arg3[%c0_116, %c1024], %198 {strides = array<i32>} : memref<2x2048xf32, #tpu.memory_space<vmem>>, vector<2x256xf32>,
    %c0_117 = arith.constant 0 : index
    %c0_118 = arith.constant 0 : index
    %200 = vector.load %arg1[%c0_117, %c0_118] : memref<2x1024xf32, #tpu.memory_space<vmem>>, vector<2x256xf32>
    %c5 = arith.constant 5 : index
    %c0_119 = arith.constant 0 : index
    %201 = memref.load %arg2[%c5, %c0_119] : memref<8x4xf32, #tpu.memory_space<smem>>
    %202 = vector.broadcast %201 : f32 to vector<2x256xf32>
    %203 = arith.mulf %200, %202 : vector<2x256xf32>
    %c0_120 = arith.constant 0 : index
    %c256_121 = arith.constant 256 : index
    %204 = vector.load %arg1[%c0_120, %c256_121] : memref<2x1024xf32, #tpu.memory_space<vmem>>, vector<2x256xf32>
    %c5_122 = arith.constant 5 : index
    %c1_123 = arith.constant 1 : index
    %205 = memref.load %arg2[%c5_122, %c1_123] : memref<8x4xf32, #tpu.memory_space<smem>>
    %206 = vector.broadcast %205 : f32 to vector<2x256xf32>
    %207 = arith.mulf %204, %206 : vector<2x256xf32>
    %208 = arith.addf %203, %207 : vector<2x256xf32>
    %c0_124 = arith.constant 0 : index
    %c512_125 = arith.constant 512 : index
    %209 = vector.load %arg1[%c0_124, %c512_125] : memref<2x1024xf32, #tpu.memory_space<vmem>>, vector<2x256xf32>
    %c5_126 = arith.constant 5 : index
    %c2_127 = arith.constant 2 : index
    %210 = memref.load %arg2[%c5_126, %c2_127] : memref<8x4xf32, #tpu.memory_space<smem>>
    %211 = vector.broadcast %210 : f32 to vector<2x256xf32>
    %212 = arith.mulf %209, %211 : vector<2x256xf32>
    %213 = arith.addf %208, %212 : vector<2x256xf32>
    %c0_128 = arith.constant 0 : index
    %c768_129 = arith.constant 768 : index
    %214 = vector.load %arg1[%c0_128, %c768_129] : memref<2x1024xf32, #tpu.memory_space<vmem>>, vector<2x256xf32>
    %c5_130 = arith.constant 5 : index
    %c3_131 = arith.constant 3 : index
    %215 = memref.load %arg2[%c5_130, %c3_131] : memref<8x4xf32, #tpu.memory_space<smem>>
    %216 = vector.broadcast %215 : f32 to vector<2x256xf32>
    %217 = arith.mulf %214, %216 : vector<2x256xf32>
    %218 = arith.addf %213, %217 : vector<2x256xf32>
    %c16_i32_132 = arith.constant 16 : i32
    %219 = tpu.dynamic_rotate %218 by %c16_i32_132 dim 1 : vector<2x256xf32>, i32 -> vector<2x256xf32>
    %220 = arith.maximumf %218, %219 : vector<2x256xf32>
    %c32_i32_133 = arith.constant 32 : i32
    %221 = tpu.dynamic_rotate %220 by %c32_i32_133 dim 1 : vector<2x256xf32>, i32 -> vector<2x256xf32>
    %222 = arith.maximumf %220, %221 : vector<2x256xf32>
    %c64_i32_134 = arith.constant 64 : i32
    %223 = tpu.dynamic_rotate %222 by %c64_i32_134 dim 1 : vector<2x256xf32>, i32 -> vector<2x256xf32>
    %224 = arith.maximumf %222, %223 : vector<2x256xf32>
    %c128_i32_135 = arith.constant 128 : i32
    %225 = tpu.dynamic_rotate %224 by %c128_i32_135 dim 1 : vector<2x256xf32>, i32 -> vector<2x256xf32>
    %226 = arith.maximumf %224, %225 : vector<2x256xf32>
    %227 = arith.subf %218, %226 : vector<2x256xf32>
    %228 = math.exp %227 : vector<2x256xf32>
    %c16_i32_136 = arith.constant 16 : i32
    %229 = tpu.dynamic_rotate %228 by %c16_i32_136 dim 1 : vector<2x256xf32>, i32 -> vector<2x256xf32>
    %230 = arith.addf %228, %229 : vector<2x256xf32>
    %c32_i32_137 = arith.constant 32 : i32
    %231 = tpu.dynamic_rotate %230 by %c32_i32_137 dim 1 : vector<2x256xf32>, i32 -> vector<2x256xf32>
    %232 = arith.addf %230, %231 : vector<2x256xf32>
    %c64_i32_138 = arith.constant 64 : i32
    %233 = tpu.dynamic_rotate %232 by %c64_i32_138 dim 1 : vector<2x256xf32>, i32 -> vector<2x256xf32>
    %234 = arith.addf %232, %233 : vector<2x256xf32>
    %c128_i32_139 = arith.constant 128 : i32
    %235 = tpu.dynamic_rotate %234 by %c128_i32_139 dim 1 : vector<2x256xf32>, i32 -> vector<2x256xf32>
    %236 = arith.addf %234, %235 : vector<2x256xf32>
    %237 = tpu.reciprocal %236 : vector<2x256xf32> -> vector<2x256xf32>
    %238 = arith.mulf %228, %237 : vector<2x256xf32>
    %c0_140 = arith.constant 0 : index
    %c1280 = arith.constant 1280 : index
    %239 = vector.load %arg3[%c0_140, %c1280] : memref<2x2048xf32, #tpu.memory_space<vmem>>, vector<2x256xf32>
    tpu.vector_store %arg3[%c0_140, %c1280], %238 {strides = array<i32>} : memref<2x2048xf32, #tpu.memory_space<vmem>>, vector<2x256xf32>,
    %c0_141 = arith.constant 0 : index
    %c0_142 = arith.constant 0 : index
    %240 = vector.load %arg1[%c0_141, %c0_142] : memref<2x1024xf32, #tpu.memory_space<vmem>>, vector<2x256xf32>
    %c6 = arith.constant 6 : index
    %c0_143 = arith.constant 0 : index
    %241 = memref.load %arg2[%c6, %c0_143] : memref<8x4xf32, #tpu.memory_space<smem>>
    %242 = vector.broadcast %241 : f32 to vector<2x256xf32>
    %243 = arith.mulf %240, %242 : vector<2x256xf32>
    %c0_144 = arith.constant 0 : index
    %c256_145 = arith.constant 256 : index
    %244 = vector.load %arg1[%c0_144, %c256_145] : memref<2x1024xf32, #tpu.memory_space<vmem>>, vector<2x256xf32>
    %c6_146 = arith.constant 6 : index
    %c1_147 = arith.constant 1 : index
    %245 = memref.load %arg2[%c6_146, %c1_147] : memref<8x4xf32, #tpu.memory_space<smem>>
    %246 = vector.broadcast %245 : f32 to vector<2x256xf32>
    %247 = arith.mulf %244, %246 : vector<2x256xf32>
    %248 = arith.addf %243, %247 : vector<2x256xf32>
    %c0_148 = arith.constant 0 : index
    %c512_149 = arith.constant 512 : index
    %249 = vector.load %arg1[%c0_148, %c512_149] : memref<2x1024xf32, #tpu.memory_space<vmem>>, vector<2x256xf32>
    %c6_150 = arith.constant 6 : index
    %c2_151 = arith.constant 2 : index
    %250 = memref.load %arg2[%c6_150, %c2_151] : memref<8x4xf32, #tpu.memory_space<smem>>
    %251 = vector.broadcast %250 : f32 to vector<2x256xf32>
    %252 = arith.mulf %249, %251 : vector<2x256xf32>
    %253 = arith.addf %248, %252 : vector<2x256xf32>
    %c0_152 = arith.constant 0 : index
    %c768_153 = arith.constant 768 : index
    %254 = vector.load %arg1[%c0_152, %c768_153] : memref<2x1024xf32, #tpu.memory_space<vmem>>, vector<2x256xf32>
    %c6_154 = arith.constant 6 : index
    %c3_155 = arith.constant 3 : index
    %255 = memref.load %arg2[%c6_154, %c3_155] : memref<8x4xf32, #tpu.memory_space<smem>>
    %256 = vector.broadcast %255 : f32 to vector<2x256xf32>
    %257 = arith.mulf %254, %256 : vector<2x256xf32>
    %258 = arith.addf %253, %257 : vector<2x256xf32>
    %c16_i32_156 = arith.constant 16 : i32
    %259 = tpu.dynamic_rotate %258 by %c16_i32_156 dim 1 : vector<2x256xf32>, i32 -> vector<2x256xf32>
    %260 = arith.maximumf %258, %259 : vector<2x256xf32>
    %c32_i32_157 = arith.constant 32 : i32
    %261 = tpu.dynamic_rotate %260 by %c32_i32_157 dim 1 : vector<2x256xf32>, i32 -> vector<2x256xf32>
    %262 = arith.maximumf %260, %261 : vector<2x256xf32>
    %c64_i32_158 = arith.constant 64 : i32
    %263 = tpu.dynamic_rotate %262 by %c64_i32_158 dim 1 : vector<2x256xf32>, i32 -> vector<2x256xf32>
    %264 = arith.maximumf %262, %263 : vector<2x256xf32>
    %c128_i32_159 = arith.constant 128 : i32
    %265 = tpu.dynamic_rotate %264 by %c128_i32_159 dim 1 : vector<2x256xf32>, i32 -> vector<2x256xf32>
    %266 = arith.maximumf %264, %265 : vector<2x256xf32>
    %267 = arith.subf %258, %266 : vector<2x256xf32>
    %268 = math.exp %267 : vector<2x256xf32>
    %c16_i32_160 = arith.constant 16 : i32
    %269 = tpu.dynamic_rotate %268 by %c16_i32_160 dim 1 : vector<2x256xf32>, i32 -> vector<2x256xf32>
    %270 = arith.addf %268, %269 : vector<2x256xf32>
    %c32_i32_161 = arith.constant 32 : i32
    %271 = tpu.dynamic_rotate %270 by %c32_i32_161 dim 1 : vector<2x256xf32>, i32 -> vector<2x256xf32>
    %272 = arith.addf %270, %271 : vector<2x256xf32>
    %c64_i32_162 = arith.constant 64 : i32
    %273 = tpu.dynamic_rotate %272 by %c64_i32_162 dim 1 : vector<2x256xf32>, i32 -> vector<2x256xf32>
    %274 = arith.addf %272, %273 : vector<2x256xf32>
    %c128_i32_163 = arith.constant 128 : i32
    %275 = tpu.dynamic_rotate %274 by %c128_i32_163 dim 1 : vector<2x256xf32>, i32 -> vector<2x256xf32>
    %276 = arith.addf %274, %275 : vector<2x256xf32>
    %277 = tpu.reciprocal %276 : vector<2x256xf32> -> vector<2x256xf32>
    %278 = arith.mulf %268, %277 : vector<2x256xf32>
    %c0_164 = arith.constant 0 : index
    %c1536 = arith.constant 1536 : index
    %279 = vector.load %arg3[%c0_164, %c1536] : memref<2x2048xf32, #tpu.memory_space<vmem>>, vector<2x256xf32>
    tpu.vector_store %arg3[%c0_164, %c1536], %278 {strides = array<i32>} : memref<2x2048xf32, #tpu.memory_space<vmem>>, vector<2x256xf32>,
    %c0_165 = arith.constant 0 : index
    %c0_166 = arith.constant 0 : index
    %280 = vector.load %arg1[%c0_165, %c0_166] : memref<2x1024xf32, #tpu.memory_space<vmem>>, vector<2x256xf32>
    %c7 = arith.constant 7 : index
    %c0_167 = arith.constant 0 : index
    %281 = memref.load %arg2[%c7, %c0_167] : memref<8x4xf32, #tpu.memory_space<smem>>
    %282 = vector.broadcast %281 : f32 to vector<2x256xf32>
    %283 = arith.mulf %280, %282 : vector<2x256xf32>
    %c0_168 = arith.constant 0 : index
    %c256_169 = arith.constant 256 : index
    %284 = vector.load %arg1[%c0_168, %c256_169] : memref<2x1024xf32, #tpu.memory_space<vmem>>, vector<2x256xf32>
    %c7_170 = arith.constant 7 : index
    %c1_171 = arith.constant 1 : index
    %285 = memref.load %arg2[%c7_170, %c1_171] : memref<8x4xf32, #tpu.memory_space<smem>>
    %286 = vector.broadcast %285 : f32 to vector<2x256xf32>
    %287 = arith.mulf %284, %286 : vector<2x256xf32>
    %288 = arith.addf %283, %287 : vector<2x256xf32>
    %c0_172 = arith.constant 0 : index
    %c512_173 = arith.constant 512 : index
    %289 = vector.load %arg1[%c0_172, %c512_173] : memref<2x1024xf32, #tpu.memory_space<vmem>>, vector<2x256xf32>
    %c7_174 = arith.constant 7 : index
    %c2_175 = arith.constant 2 : index
    %290 = memref.load %arg2[%c7_174, %c2_175] : memref<8x4xf32, #tpu.memory_space<smem>>
    %291 = vector.broadcast %290 : f32 to vector<2x256xf32>
    %292 = arith.mulf %289, %291 : vector<2x256xf32>
    %293 = arith.addf %288, %292 : vector<2x256xf32>
    %c0_176 = arith.constant 0 : index
    %c768_177 = arith.constant 768 : index
    %294 = vector.load %arg1[%c0_176, %c768_177] : memref<2x1024xf32, #tpu.memory_space<vmem>>, vector<2x256xf32>
    %c7_178 = arith.constant 7 : index
    %c3_179 = arith.constant 3 : index
    %295 = memref.load %arg2[%c7_178, %c3_179] : memref<8x4xf32, #tpu.memory_space<smem>>
    %296 = vector.broadcast %295 : f32 to vector<2x256xf32>
    %297 = arith.mulf %294, %296 : vector<2x256xf32>
    %298 = arith.addf %293, %297 : vector<2x256xf32>
    %c16_i32_180 = arith.constant 16 : i32
    %299 = tpu.dynamic_rotate %298 by %c16_i32_180 dim 1 : vector<2x256xf32>, i32 -> vector<2x256xf32>
    %300 = arith.maximumf %298, %299 : vector<2x256xf32>
    %c32_i32_181 = arith.constant 32 : i32
    %301 = tpu.dynamic_rotate %300 by %c32_i32_181 dim 1 : vector<2x256xf32>, i32 -> vector<2x256xf32>
    %302 = arith.maximumf %300, %301 : vector<2x256xf32>
    %c64_i32_182 = arith.constant 64 : i32
    %303 = tpu.dynamic_rotate %302 by %c64_i32_182 dim 1 : vector<2x256xf32>, i32 -> vector<2x256xf32>
    %304 = arith.maximumf %302, %303 : vector<2x256xf32>
    %c128_i32_183 = arith.constant 128 : i32
    %305 = tpu.dynamic_rotate %304 by %c128_i32_183 dim 1 : vector<2x256xf32>, i32 -> vector<2x256xf32>
    %306 = arith.maximumf %304, %305 : vector<2x256xf32>
    %307 = arith.subf %298, %306 : vector<2x256xf32>
    %308 = math.exp %307 : vector<2x256xf32>
    %c16_i32_184 = arith.constant 16 : i32
    %309 = tpu.dynamic_rotate %308 by %c16_i32_184 dim 1 : vector<2x256xf32>, i32 -> vector<2x256xf32>
    %310 = arith.addf %308, %309 : vector<2x256xf32>
    %c32_i32_185 = arith.constant 32 : i32
    %311 = tpu.dynamic_rotate %310 by %c32_i32_185 dim 1 : vector<2x256xf32>, i32 -> vector<2x256xf32>
    %312 = arith.addf %310, %311 : vector<2x256xf32>
    %c64_i32_186 = arith.constant 64 : i32
    %313 = tpu.dynamic_rotate %312 by %c64_i32_186 dim 1 : vector<2x256xf32>, i32 -> vector<2x256xf32>
    %314 = arith.addf %312, %313 : vector<2x256xf32>
    %c128_i32_187 = arith.constant 128 : i32
    %315 = tpu.dynamic_rotate %314 by %c128_i32_187 dim 1 : vector<2x256xf32>, i32 -> vector<2x256xf32>
    %316 = arith.addf %314, %315 : vector<2x256xf32>
    %317 = tpu.reciprocal %316 : vector<2x256xf32> -> vector<2x256xf32>
    %318 = arith.mulf %308, %317 : vector<2x256xf32>
    %c0_188 = arith.constant 0 : index
    %c1792 = arith.constant 1792 : index
    %319 = vector.load %arg3[%c0_188, %c1792] : memref<2x2048xf32, #tpu.memory_space<vmem>>, vector<2x256xf32>
    tpu.vector_store %arg3[%c0_188, %c1792], %318 {strides = array<i32>} : memref<2x2048xf32, #tpu.memory_space<vmem>>, vector<2x256xf32>,
    return
  }
  func.func @transform_0(%arg0: i32) -> (i32, i32) {
    %c0_i32 = arith.constant 0 : i32
    %c0_i32_0 = arith.constant 0 : i32
    return %arg0, %c0_i32 : i32, i32
  }
  func.func @transform_1(%arg0: i32) -> (i32, i32) {
    %c0_i32 = arith.constant 0 : i32
    %c0_i32_0 = arith.constant 0 : i32
    %c0_i32_1 = arith.constant 0 : i32
    return %c0_i32, %c0_i32_0 : i32, i32
  }
  func.func @transform_2(%arg0: i32) -> (i32, i32) {
    %c0_i32 = arith.constant 0 : i32
    %c0_i32_0 = arith.constant 0 : i32
    return %arg0, %c0_i32 : i32, i32
  }
}

</mosaic_0001>

<bundles_post_ra>
// kernel: tpu_custom_call.1
= control target key start
LH: loop header
LB: loop body
LE: loop exit
PB: predicated region body
PF: predicated region fallthrough
CT: control target
= control target key end

     0   :  { %7 = vsyncpa [#allocation3], 0  ;;  %s2820_s0 = inlined_call_operand.hbm [shape: f32[2,1024], index: 0, kind: input, shape index: {}]   ;;  %s2821_s1 = inlined_call_operand.vmem [shape: f32[8,4], index: 1, kind: input, shape index: {}]   ;;  %s2822_s2 = inlined_call_operand.hbm [shape: f32[2,2048], index: 2, kind: output, shape index: {}]  }
   0x1   :  { %8 = vsyncpa [#allocation5], 0 }
   0x2   :  { %9 = vsyncpa [#allocation4], 0  ;;  %s26_s11 = sshll.u32 %s2821_s1, 4  ;;  %s2082_s12 = smov [#allocation2]   ;;  %s27_s11 = int_to_ptr.vmem [resolvable:$true] %s26_s11 }
   0x3   :  { %s16_s13 = sshll.u32 %s2082_s12, 4  ;;  %s17_s13 = int_to_ptr.vmem [resolvable:$true] %s16_s13 }
   0x4   :  { %s2032_s14 = scalar_lea.vmem %s17_s13, 256  ;;  %p2037_p1 = scmp.lt.s32.totalorder %s17_s13, %s17_s13 }
   0x5   :  { %p2033_p0 = scmp.ne.s32.totalorder %s17_s13, %s2032_s14  ;;  %p2038_p2 = scmp.lt.s32.totalorder %s2032_s14, %s2032_s14 }
   0x7   :  { %p2039_p3 = por %p2038_p2, %p2037_p1 }
   0x9   :  { %p2040_p4 = pnand %p2039_p3, %p2033_p0 }
   0xb   :  { %2043 = shalt.err (!%p2040_p4)
}
   0xc   :  { %19 = dma.hbm_to_vmem [thread:$0]  %s2820_s0, 256, %s17_s13, [#allocation3]  }
   0xd   :  { %s2044_s17 = scalar_lea.vmem %s27_s11, 128  ;;  %p2049_p6 = scmp.lt.s32.totalorder %s27_s11, %s27_s11 }
   0xe   :  { %p2045_p5 = scmp.ne.s32.totalorder %s27_s11, %s2044_s17  ;;  %p2050_p7 = scmp.lt.s32.totalorder %s2044_s17, %s2044_s17 }
  0x10   :  { %p2051_p8 = por %p2050_p7, %p2049_p6 }
  0x12   :  { %p2052_p9 = pnand %p2051_p8, %p2045_p5 }
  0x14   :  { %2055 = shalt.err (!%p2052_p9)
}
  0x15   :  { %s2083_s1 = smov [#allocation6]  }
  0x16   :  { %29 = dma.vmem_to_smem %s27_s11, 128, %s2083_s1, [#allocation5]  }
  0x17   :  { %2076 = dma.done.wait [#allocation3], 256  }
  0x18   :  { %2077 = vsyncadd [#allocation3], 4294967040 }
  0x19   :  { %2078 = dma.done.wait [#allocation5], 128  }
  0x1a   :  { %2079 = vsyncadd [#allocation5], 4294967168 }
  0x1b   :  { %36 = sfence }
  0x1c   :  { %s1957_s18 = sld [smem:[#allocation6 + $0x80]]  ;;  %v2084_v0 = vmov 1983009808   ;;  %v60_v2 = vlaneseq  ;;  %v279_v3 = vld [vmem:[#allocation2] sm:$0xf]  ;;  %s2085_s7 = smov 16  }
  0x1d   :  { %s1958_s19 = sld [smem:[#allocation6 + $0x81]]  ;;  %v58_v1 = vunpack.c.l.s4 %v2084_v0  ;;  %v283_v4 = vld [vmem:[#allocation2 + $0x4] sm:$0xf]  ;;  %v288_v6 = vld [vmem:[#allocation2 + $0x8] sm:$0xf] }
  0x1e   :  { %s1959_s20 = sld [smem:[#allocation6 + $0x82]]  ;;  %v293_v9 = vld [vmem:[#allocation2 + $0xc] sm:$0xf]  ;;  %v61_v11 = vshrl.u32 %v60_v2, 7  ;;  %v37_v14 = vld [vmem:[#allocation2] sm:$0xf] }
  0x1f   :  { %s1960_s21 = sld [smem:[#allocation6 + $0x83]]  ;;  %v59_v10 = vunpack.c.0.s8 %v58_v1  ;;  %v41_v17 = vld [vmem:[#allocation2 + $0x4] sm:$0xf]  ;;  %v46_v21 = vld [vmem:[#allocation2 + $0x8] sm:$0xf] }
  0x20   :  { %s38_s0 = sld [smem:[#allocation6]]  ;;  %v51_v24 = vld [vmem:[#allocation2 + $0xc] sm:$0xf]  ;;  %v516_v29 = vld [vmem:[#allocation2] sm:$0xf] }
  0x21   :  { %s1954_s22 = sld [smem:[#allocation6 + $0x1]]  ;;  %v2117_v25 = vsub.s32 %v59_v10, %v61_v11  ;;  %v520_v32 = vld [vmem:[#allocation2 + $0x4] sm:$0xf]  ;;  %v525_v37 = vld [vmem:[#allocation2 + $0x8] sm:$0xf] }
  0x22   :  { %v281_v5 = vstv %s1957_s18  ;;  %s1955_s23 = sld [smem:[#allocation6 + $0x2]]  ;;  %v530_v40 = vld [vmem:[#allocation2 + $0xc] sm:$0xf]  ;;  %v753_v47 = vld [vmem:[#allocation2] sm:$0xf] }
  0x23   :  { %v282_v7 = vmul.f32 %v281_v5, %v279_v3  ;;  %v285_v8 = vstv %s1958_s19  ;;  %s2110_s24 = sld [smem:[#allocation6 + $0x3]]  ;;  %v757_v48 = vld [vmem:[#allocation2 + $0x4] sm:$0xf]  ;;  %v762_v55 = vld [vmem:[#allocation2 + $0x8] sm:$0xf] }
  0x24   :  { %v286_v12 = vmul.f32 %v285_v8, %v283_v4  ;;  %v290_v13 = vstv %s1959_s20  ;;  %s1961_s25 = sld [smem:[#allocation6 + $0x100]]  ;;  %v767_v60 = vld [vmem:[#allocation2 + $0xc] sm:$0xf]  ;;  %v990_v61 = vld [vmem:[#allocation2] sm:$0xf] }
  0x25   :  { %v291_v15 = vmul.f32 %v290_v13, %v288_v6  ;;  %v295_v16 = vstv %s1960_s21  ;;  %s2113_s26 = sld [smem:[#allocation6 + $0x101]]  ;;  %v994_v0 = vld [vmem:[#allocation2 + $0x4] sm:$0xf]  ;;  %v999_v5 = vld [vmem:[#allocation2 + $0x8] sm:$0xf]  ;;  %s2086_s21 = smov 32  }
  0x26   :  { %v287_v18 = vadd.f32 %v286_v12, %v282_v7  ;;  %v296_v19 = vmul.f32 %v295_v16, %v293_v9  ;;  %v39_v20 = vstv %s38_s0  ;;  %s1963_s27 = sld [smem:[#allocation6 + $0x102]]  ;;  %v1004_v10 = vld [vmem:[#allocation2 + $0xc] sm:$0xf]  ;;  %s2087_s0 = smov 64  }
  0x27   :  { %v40_v22 = vmul.f32 %v39_v20, %v37_v14  ;;  %v43_v23 = vstv %s1954_s22  ;;  %s2115_s28 = sld [smem:[#allocation6 + $0x103]]  ;;  %v1227_v14 = vld [vmem:[#allocation2] sm:$0xf]  ;;  %s2088_s22 = smov [#allocation7]  }
  0x28   :  { %v292_v26 = vadd.f32 %v291_v15, %v287_v18  ;;  %v44_v27 = vmul.f32 %v43_v23, %v41_v17  ;;  %v48_v28 = vstv %s1955_s23  ;;  %s2119_s29 = sld [smem:[#allocation6 + $0x180]]  ;;  %v1231_v18 = vld [vmem:[#allocation2 + $0x4] sm:$0xf]  ;;  %v1236_v23 = vld [vmem:[#allocation2 + $0x8] sm:$0xf]  ;;  %s1944_s23 = sshll.u32 %s2088_s22, 4  ;;  %s1945_s23 = int_to_ptr.vmem [resolvable:$true] %s1944_s23 }
  0x29   :  { %v49_v30 = vmul.f32 %v48_v28, %v46_v21  ;;  %v53_v31 = vstv %s2110_s24  ;;  %s2122_s30 = sld [smem:[#allocation6 + $0x181]]  ;;  %v1241_v28 = vld [vmem:[#allocation2 + $0xc] sm:$0xf]  ;;  %s2056_s24 = scalar_lea.vmem %s1945_s23, 512 }
  0x2a   :  { %v2124_v33 = vadd.f32 %v296_v19, %v292_v26  ;;  %v45_v34 = vadd.f32 %v44_v27, %v40_v22  ;;  %v54_v35 = vmul.f32 %v53_v31, %v51_v24  ;;  %v518_v36 = vstv %s1961_s25  ;;  %s2126_s3 = sld [smem:[#allocation6 + $0x182]]  ;;  %p2057_p10 = scmp.ne.s32.totalorder %s1945_s23, %s2056_s24 }
  0x2b   :  { %v519_v38 = vmul.f32 %v518_v36, %v516_v29  ;;  %v522_v39 = vstv %s2113_s26  ;;  %s2129_s4 = sld [smem:[#allocation6 + $0x183]]  ;;  %p2061_p11 = scmp.lt.s32.totalorder %s1945_s23, %s1945_s23 }
  0x2c   :  { %v305_v41 = vrot.slane %v2124_v33, %v2117_v25  ;;  %v50_v42 = vadd.f32 %v49_v30, %v45_v34  ;;  %v523_v43 = vmul.f32 %v522_v39, %v520_v32  ;;  %v527_v44 = vstv %s1963_s27  ;;  %s2133_s5 = sld [smem:[#allocation6 + $0x200]]  ;;  %v1464_v32 = vld [vmem:[#allocation2] sm:$0xf]  ;;  %p2062_p12 = scmp.lt.s32.totalorder %s2056_s24, %s2056_s24 }
  0x2d   :  { %v528_v45 = vmul.f32 %v527_v44, %v525_v37  ;;  %v532_v46 = vstv %s2115_s28  ;;  %s2136_s6 = sld [smem:[#allocation6 + $0x201]]  ;;  %v1468_v37 = vld [vmem:[#allocation2 + $0x4] sm:$0xf] }
  0x2e   :  { %309 = vrot.lane.b32.xlu1 %v305_v41, %s2085_s7  ;;  %v306_v49 = vcombine.high %v305_v41, %v305_v41  ;;  %v2139_v50 = vadd.f32 %v54_v35, %v50_v42  ;;  %v524_v51 = vadd.f32 %v523_v43, %v519_v38  ;;  %v533_v52 = vmul.f32 %v532_v46, %v530_v40  ;;  %s2141_s8 = sld [smem:[#allocation6 + $0x202]]  ;;  %v1473_v42 = vld [vmem:[#allocation2 + $0x8] sm:$0xf]  ;;  %v1478_v46 = vld [vmem:[#allocation2 + $0xc] sm:$0xf]  ;;  %p2063_p13 = por %p2062_p12, %p2061_p11 }
  0x2f   :  { %v755_v53 = vstv %s2119_s29  ;;  %v759_v54 = vstv %s2122_s30  ;;  %s2145_s9 = sld [smem:[#allocation6 + $0x203]] }
  0x30   :  { %v2149_v56 = vrot.slane %v2139_v50, %v2117_v25  ;;  %v529_v57 = vadd.f32 %v528_v45, %v524_v51  ;;  %v756_v58 = vmul.f32 %v755_v53, %v753_v47  ;;  %v760_v59 = vmul.f32 %v759_v54, %v757_v48  ;;  %s2151_s10 = sld [smem:[#allocation6 + $0x280]]  ;;  %v1701_v54 = vld [vmem:[#allocation2] sm:$0xf]  ;;  %p2064_p0 = pnand %p2063_p13, %p2057_p10 }
  0x31   :  { %v764_v62 = vstv %s2126_s3  ;;  %v769_v63 = vstv %s2129_s4  ;;  %s2155_s11 = sld [smem:[#allocation6 + $0x281]] }
  0x32   :  { %67 = vrot.lane.b32.xlu0 %v2149_v56, %s2085_s7  ;;  %311 = vrot.lane.b32.xlu1 %v306_v49, %s2085_s7  ;;  %v2160_v1 = vadd.f32 %v533_v52, %v529_v57  ;;  %v761_v3 = vadd.f32 %v760_v59, %v756_v58  ;;  %v992_v4 = vstv %s2133_s5  ;;  %s2163_s12 = sld [smem:[#allocation6 + $0x282]]  ;;  %v765_v6 = vmul.f32 %v764_v62, %v762_v55  ;;  %v1705_v55 = vld [vmem:[#allocation2 + $0x4] sm:$0xf] }
  0x33   :  { %v770_v7 = vmul.f32 %v769_v63, %v767_v60  ;;  %v993_v8 = vmul.f32 %v992_v4, %v990_v61  ;;  %v996_v9 = vstv %s2136_s6  ;;  %s2166_s13 = sld [smem:[#allocation6 + $0x283]]  ;;  %v64_v61 = vcombine.high %v2149_v56, %v2149_v56 }
  0x34   :  { %v542_v11 = vrot.slane %v2160_v1, %v2117_v25  ;;  %v997_v12 = vmul.f32 %v996_v9, %v994_v0  ;;  %v1001_v13 = vstv %s2141_s8  ;;  %s2171_s14 = sld [smem:[#allocation6 + $0x300]]  ;;  %v766_v15 = vadd.f32 %v765_v6, %v761_v3  ;;  %v1710_v0 = vld [vmem:[#allocation2 + $0x8] sm:$0xf] }
  0x35   :  { %v1002_v16 = vmul.f32 %v1001_v13, %v999_v5  ;;  %v1006_v17 = vstv %s2145_s9  ;;  %s2174_s15 = sld [smem:[#allocation6 + $0x301]] }
  0x36   :  { %546 = vrot.lane.b32.xlu0 %v542_v11, %s2085_s7  ;;  %v543_v19 = vcombine.high %v542_v11, %v542_v11  ;;  %v998_v20 = vadd.f32 %v997_v12, %v993_v8  ;;  %v1007_v21 = vmul.f32 %v1006_v17, %v1004_v10  ;;  %v1229_v22 = vstv %s2151_s10  ;;  %s2178_s16 = sld [smem:[#allocation6 + $0x302]] }
  0x37   :  { %v2180_v24 = vadd.f32 %v770_v7, %v766_v15  ;;  %v1230_v26 = vmul.f32 %v1229_v22, %v1227_v14  ;;  %v1233_v27 = vstv %s2155_s11  ;;  %s2183_s17 = sld [smem:[#allocation6 + $0x303]]  ;;  %v1715_v7 = vld [vmem:[#allocation2 + $0xc] sm:$0xf] }
  0x38   :  { %548 = vrot.lane.b32.xlu1 %v543_v19, %s2085_s7  ;;  %v1003_v29 = vadd.f32 %v1002_v16, %v998_v20  ;;  %v1234_v30 = vmul.f32 %v1233_v27, %v1231_v18  ;;  %v1238_v31 = vstv %s2163_s12  ;;  %s2187_s1 = sld [smem:[#allocation6 + $0x380]] }
  0x39   :  { %v779_v34 = vrot.slane %v2180_v24, %v2117_v25  ;;  %v1239_v35 = vmul.f32 %v1238_v31, %v1236_v23  ;;  %v1243_v36 = vstv %s2166_s13  ;;  %s2192_s18 = sld [smem:[#allocation6 + $0x381]] }
  0x3a   :  { %v2194_v38 = vadd.f32 %v1007_v21, %v1003_v29  ;;  %v1235_v39 = vadd.f32 %v1234_v30, %v1230_v26  ;;  %v1244_v40 = vmul.f32 %v1243_v36, %v1241_v28  ;;  %v1466_v41 = vstv %s2171_s14  ;;  %s2197_s19 = sld [smem:[#allocation6 + $0x382]] }
  0x3b   :  { %783 = vrot.lane.b32.xlu0 %v779_v34, %s2085_s7  ;;  %v780_v43 = vcombine.high %v779_v34, %v779_v34  ;;  %v1467_v44 = vmul.f32 %v1466_v41, %v1464_v32  ;;  %v1470_v45 = vstv %s2174_s15  ;;  %s2201_s20 = sld [smem:[#allocation6 + $0x383]]  ;;  %v2236_v26 = vand.u32 127, %v60_v2 }
  0x3c   :  { %v1016_v47 = vrot.slane %v2194_v38, %v2117_v25  ;;  %v1240_v48 = vadd.f32 %v1239_v35, %v1235_v39  ;;  %v1471_v49 = vmul.f32 %v1470_v45, %v1468_v37  ;;  %v1475_v51 = vstv %s2178_s16 }
  0x3d   :  { %785 = vrot.lane.b32.xlu1 %v780_v43, %s2085_s7  ;;  %v1476_v52 = vmul.f32 %v1475_v51, %v1473_v42  ;;  %v1480_v53 = vstv %s2183_s17  ;;  %vm73_vm0 = vcmp.lt.s32.totalorder %v2236_v26, 16  ;;  %vm103_vm1 = vcmp.lt.s32.totalorder %v2236_v26, 32 }
  0x3e   :  { %v1017_v57 = vcombine.high %v1016_v47, %v1016_v47  ;;  %v2208_v58 = vadd.f32 %v1244_v40, %v1240_v48  ;;  %v1472_v59 = vadd.f32 %v1471_v49, %v1467_v44  ;;  %v1481_v60 = vmul.f32 %v1480_v53, %v1478_v46 }
  0x3f   :  { %1020 = vrot.lane.b32.xlu0 %v1016_v47, %s2085_s7  ;;  %v1703_v62 = vstv %s2187_s1  ;;  %v1707_v63 = vstv %s2192_s18  ;;  %vm133_vm2 = vcmp.lt.s32.totalorder %v2236_v26, 64 }
  0x40   :  { %v1253_v3 = vrot.slane %v2208_v58, %v2117_v25  ;;  %v1477_v4 = vadd.f32 %v1476_v52, %v1472_v59  ;;  %v1704_v5 = vmul.f32 %v1703_v62, %v1701_v54  ;;  %v1708_v6 = vmul.f32 %v1707_v63, %v1705_v55 }
  0x41   :  { %1022 = vrot.lane.b32.xlu1 %v1017_v57, %s2085_s7  ;;  %v1712_v8 = vstv %s2197_s19  ;;  %v1717_v9 = vstv %s2201_s20 }
  0x42   :  { %v1254_v10 = vcombine.high %v1253_v3, %v1253_v3  ;;  %v2220_v11 = vadd.f32 %v1481_v60, %v1477_v4  ;;  %v1709_v56 = vadd.f32 %v1708_v6, %v1704_v5  ;;  %v1713_v12 = vmul.f32 %v1712_v8, %v1710_v0 }
  0x43   :  { %69 = vrot.lane.b32.xlu0 %v64_v61, %s2085_s7  ;;  %v1718_v13 = vmul.f32 %v1717_v9, %v1715_v7 }
  0x44   :  { %v1490_v14 = vrot.slane %v2220_v11, %v2117_v25  ;;  %v1714_v15 = vadd.f32 %v1713_v12, %v1709_v56 }
  0x45   :  { %1259 = vrot.lane.b32.xlu1 %v1254_v10, %s2085_s7 }
  0x46   :  { %v1491_v16 = vcombine.high %v1490_v14, %v1490_v14  ;;  %v2226_v17 = vadd.f32 %v1718_v13, %v1714_v15 }
  0x47   :  { %1257 = vrot.lane.b32.xlu0 %v1253_v3, %s2085_s7 }
  0x48   :  { %v1727_v18 = vrot.slane %v2226_v17, %v2117_v25 }
  0x49   :  { %1496 = vrot.lane.b32.xlu1 %v1491_v16, %s2085_s7 }
  0x4a   :  { %v1728_v19 = vcombine.high %v1727_v18, %v1727_v18 }
  0x4b   :  { %1494 = vrot.lane.b32.xlu0 %v1490_v14, %s2085_s7 }
  0x4d   :  { %1733 = vrot.lane.b32.xlu1 %v1728_v19, %s2085_s7 }
  0x4f   :  { %1731 = vrot.lane.b32.xlu0 %v1727_v18, %s2085_s7 }
  0xa0   :  { %v310_v20 = vpop.permute.xlu1 %309 }
  0xa4   :  { %v68_v21 = vpop.permute.xlu0 %67  ;;  %v312_v22 = vpop.permute.xlu1 %311 }
  0xa5   :  { %v313_v29 = vsel %vm73_vm0, %v310_v20, %v312_v22  ;;  %v314_v30 = vsel %vm73_vm0, %v312_v22, %v310_v20 }
  0xa6   :  { %v317_v34 = vcombine.low %v314_v30, %v313_v29 }
  0xa8   :  { %v547_v23 = vpop.permute.xlu0 %546  ;;  %v324_v39 = vrot.slane %v317_v34, %v2117_v25 }
  0xaa   :  { %v549_v27 = vpop.permute.xlu1 %548  ;;  %v2258_v49 = vmax.f32 %v2124_v33, %v324_v39 }
  0xab   :  { %v550_v36 = vsel %vm73_vm0, %v547_v23, %v549_v27  ;;  %v551_v2 = vsel %vm73_vm0, %v549_v27, %v547_v23 }
  0xac   :  { %v554_v42 = vcombine.low %v551_v2, %v550_v36  ;;  %v334_v61 = vrot.slane %v2258_v49, %v2117_v25 }
  0xad   :  { %v784_v28 = vpop.permute.xlu0 %783 }
  0xae   :  { %v561_v51 = vrot.slane %v554_v42, %v2117_v25  ;;  %v335_v10 = vcombine.high %v334_v61, %v334_v61 }
  0xaf   :  { %v786_v31 = vpop.permute.xlu1 %785 }
  0xb0   :  { %v787_v45 = vsel %vm73_vm0, %v784_v28, %v786_v31  ;;  %v788_v46 = vsel %vm73_vm0, %v786_v31, %v784_v28  ;;  %v2279_v5 = vmax.f32 %v2160_v1, %v561_v51 }
  0xb1   :  { %v1021_v32 = vpop.permute.xlu0 %1020  ;;  %v791_v52 = vcombine.low %v788_v46, %v787_v45 }
  0xb2   :  { %v571_v56 = vrot.slane %v2279_v5, %v2117_v25 }
  0xb3   :  { %v1023_v35 = vpop.permute.xlu1 %1022  ;;  %v798_v0 = vrot.slane %v791_v52, %v2117_v25 }
  0xb4   :  { %v1024_v54 = vsel %vm73_vm0, %v1021_v32, %v1023_v35  ;;  %v1025_v55 = vsel %vm73_vm0, %v1023_v35, %v1021_v32  ;;  %v572_v20 = vcombine.high %v571_v56, %v571_v56 }
  0xb5   :  { %v70_v37 = vpop.permute.xlu0 %69  ;;  %v1028_v3 = vcombine.low %v1025_v55, %v1024_v54  ;;  %v2291_v12 = vmax.f32 %v2180_v24, %v798_v0 }
  0xb6   :  { %v74_v40 = vsel %vm73_vm0, %v68_v21, %v70_v37  ;;  %v75_v41 = vsel %vm73_vm0, %v70_v37, %v68_v21 }
  0xb7   :  { %v78_v43 = vcombine.low %v75_v41, %v74_v40  ;;  %v1260_v44 = vpop.permute.xlu1 %1259  ;;  %v1035_v9 = vrot.slane %v1028_v3, %v2117_v25  ;;  %v808_v21 = vrot.slane %v2291_v12, %v2117_v25 }
  0xb9   :  { %v85_v47 = vrot.slane %v78_v43, %v2117_v25  ;;  %v1258_v48 = vpop.permute.xlu0 %1257  ;;  %v2303_v22 = vmax.f32 %v2194_v38, %v1035_v9  ;;  %v809_v29 = vcombine.high %v808_v21, %v808_v21 }
  0xba   :  { %v1261_v62 = vsel %vm73_vm0, %v1258_v48, %v1260_v44  ;;  %v1262_v63 = vsel %vm73_vm0, %v1260_v44, %v1258_v48 }
  0xbb   :  { %v2262_v53 = vmax.f32 %v2139_v50, %v85_v47  ;;  %v1497_v59 = vpop.permute.xlu1 %1496  ;;  %v1265_v6 = vcombine.low %v1262_v63, %v1261_v62  ;;  %v1045_v30 = vrot.slane %v2303_v22, %v2117_v25 }
  0xbd   :  { %v95_v57 = vrot.slane %v2262_v53, %v2117_v25  ;;  %v1495_v60 = vpop.permute.xlu0 %1494  ;;  %v1272_v15 = vrot.slane %v1265_v6, %v2117_v25  ;;  %v1046_v35 = vcombine.high %v1045_v30, %v1045_v30 }
  0xbe   :  { %v1498_v7 = vsel %vm73_vm0, %v1495_v60, %v1497_v59  ;;  %v1499_v8 = vsel %vm73_vm0, %v1497_v59, %v1495_v60 }
  0xbf   :  { %99 = vrot.lane.b32.xlu0 %v95_v57, %s2086_s21  ;;  %v96_v4 = vcombine.high %v95_v57, %v95_v57  ;;  %v1734_v13 = vpop.permute.xlu1 %1733  ;;  %v1502_v16 = vcombine.low %v1499_v8, %v1498_v7  ;;  %v2308_v28 = vmax.f32 %v2208_v58, %v1272_v15 }
  0xc1   :  { %101 = vrot.lane.b32.xlu1 %v96_v4, %s2086_s21  ;;  %v1732_v14 = vpop.permute.xlu0 %1731  ;;  %v1509_v23 = vrot.slane %v1502_v16, %v2117_v25  ;;  %v1282_v32 = vrot.slane %v2308_v28, %v2117_v25 }
  0xc2   :  { %v1735_v18 = vsel %vm73_vm0, %v1732_v14, %v1734_v13  ;;  %v1736_v19 = vsel %vm73_vm0, %v1734_v13, %v1732_v14 }
  0xc3   :  { %338 = vrot.lane.b32.xlu0 %v334_v61, %s2086_s21  ;;  %v1739_v27 = vcombine.low %v1736_v19, %v1735_v18  ;;  %v2318_v34 = vmax.f32 %v2220_v11, %v1509_v23  ;;  %v1283_v36 = vcombine.high %v1282_v32, %v1282_v32 }
  0xc5   :  { %340 = vrot.lane.b32.xlu1 %v335_v10, %s2086_s21  ;;  %v1746_v31 = vrot.slane %v1739_v27, %v2117_v25  ;;  %v1519_v2 = vrot.slane %v2318_v34, %v2117_v25 }
  0xc7   :  { %575 = vrot.lane.b32.xlu0 %v571_v56, %s2086_s21  ;;  %v2325_v37 = vmax.f32 %v2226_v17, %v1746_v31  ;;  %v1520_v39 = vcombine.high %v1519_v2, %v1519_v2 }
  0xc9   :  { %577 = vrot.lane.b32.xlu1 %v572_v20, %s2086_s21  ;;  %v1756_v40 = vrot.slane %v2325_v37, %v2117_v25 }
  0xcb   :  { %812 = vrot.lane.b32.xlu0 %v808_v21, %s2086_s21  ;;  %v1757_v41 = vcombine.high %v1756_v40, %v1756_v40 }
  0xcd   :  { %814 = vrot.lane.b32.xlu1 %v809_v29, %s2086_s21 }
  0xcf   :  { %1049 = vrot.lane.b32.xlu0 %v1045_v30, %s2086_s21 }
  0xd1   :  { %1051 = vrot.lane.b32.xlu1 %v1046_v35, %s2086_s21 }
  0xd3   :  { %1286 = vrot.lane.b32.xlu0 %v1282_v32, %s2086_s21 }
  0xd5   :  { %1288 = vrot.lane.b32.xlu1 %v1283_v36, %s2086_s21 }
  0xd7   :  { %1523 = vrot.lane.b32.xlu0 %v1519_v2, %s2086_s21 }
  0xd9   :  { %1525 = vrot.lane.b32.xlu1 %v1520_v39, %s2086_s21 }
  0xdb   :  { %1760 = vrot.lane.b32.xlu0 %v1756_v40, %s2086_s21 }
  0xdd   :  { %1762 = vrot.lane.b32.xlu1 %v1757_v41, %s2086_s21 }
 0x131   :  { %v100_v42 = vpop.permute.xlu0 %99 }
 0x133   :  { %v102_v43 = vpop.permute.xlu1 %101 }
 0x134   :  { %v104_v44 = vsel %vm103_vm1, %v100_v42, %v102_v43  ;;  %v105_v45 = vsel %vm103_vm1, %v102_v43, %v100_v42 }
 0x135   :  { %v108_v46 = vcombine.low %v105_v45, %v104_v44  ;;  %v339_v47 = vpop.permute.xlu0 %338 }
 0x137   :  { %v115_v48 = vrot.slane %v108_v46, %v2117_v25  ;;  %v341_v51 = vpop.permute.xlu1 %340 }
 0x138   :  { %v342_v52 = vsel %vm103_vm1, %v339_v47, %v341_v51  ;;  %v343_v54 = vsel %vm103_vm1, %v341_v51, %v339_v47 }
 0x139   :  { %v346_v55 = vcombine.low %v343_v54, %v342_v52  ;;  %v576_v57 = vpop.permute.xlu0 %575  ;;  %v2346_v59 = vmax.f32 %v2262_v53, %v115_v48 }
 0x13b   :  { %v353_v60 = vrot.slane %v346_v55, %v2117_v25  ;;  %v578_v61 = vpop.permute.xlu1 %577  ;;  %v125_v62 = vrot.slane %v2346_v59, %v2117_v25 }
 0x13c   :  { %v579_v63 = vsel %vm103_vm1, %v576_v57, %v578_v61  ;;  %v580_v0 = vsel %vm103_vm1, %v578_v61, %v576_v57 }
 0x13d   :  { %v583_v3 = vcombine.low %v580_v0, %v579_v63  ;;  %129 = vrot.lane.b32.xlu0 %v125_v62, %s2087_s0  ;;  %v813_v4 = vpop.permute.xlu0 %812  ;;  %v126_v6 = vcombine.high %v125_v62, %v125_v62  ;;  %v2357_v53 = vmax.f32 %v2258_v49, %v353_v60 }
 0x13f   :  { %v590_v7 = vrot.slane %v583_v3, %v2117_v25  ;;  %v815_v8 = vpop.permute.xlu1 %814  ;;  %131 = vrot.lane.b32.xlu1 %v126_v6, %s2087_s0  ;;  %v363_v9 = vrot.slane %v2357_v53, %v2117_v25 }
 0x140   :  { %v816_v10 = vsel %vm103_vm1, %v813_v4, %v815_v8  ;;  %v817_v56 = vsel %vm103_vm1, %v815_v8, %v813_v4 }
 0x141   :  { %v820_v13 = vcombine.low %v817_v56, %v816_v10  ;;  %367 = vrot.lane.b32.xlu0 %v363_v9, %s2087_s0  ;;  %v1050_v14 = vpop.permute.xlu0 %1049  ;;  %v364_v49 = vcombine.high %v363_v9, %v363_v9  ;;  %v2369_v15 = vmax.f32 %v2279_v5, %v590_v7 }
 0x143   :  { %v827_v16 = vrot.slane %v820_v13, %v2117_v25  ;;  %v1052_v18 = vpop.permute.xlu1 %1051  ;;  %369 = vrot.lane.b32.xlu1 %v364_v49, %s2087_s0  ;;  %v600_v19 = vrot.slane %v2369_v15, %v2117_v25 }
 0x144   :  { %v1053_v20 = vsel %vm103_vm1, %v1050_v14, %v1052_v18  ;;  %v1054_v21 = vsel %vm103_vm1, %v1052_v18, %v1050_v14 }
 0x145   :  { %v1057_v23 = vcombine.low %v1054_v21, %v1053_v20  ;;  %604 = vrot.lane.b32.xlu0 %v600_v19, %s2087_s0  ;;  %v1287_v27 = vpop.permute.xlu0 %1286  ;;  %v601_v5 = vcombine.high %v600_v19, %v600_v19  ;;  %v2381_v29 = vmax.f32 %v2291_v12, %v827_v16 }
 0x147   :  { %v1064_v30 = vrot.slane %v1057_v23, %v2117_v25  ;;  %v1289_v31 = vpop.permute.xlu1 %1288  ;;  %606 = vrot.lane.b32.xlu1 %v601_v5, %s2087_s0  ;;  %v837_v32 = vrot.slane %v2381_v29, %v2117_v25 }
 0x148   :  { %v1290_v35 = vsel %vm103_vm1, %v1287_v27, %v1289_v31  ;;  %v1291_v36 = vsel %vm103_vm1, %v1289_v31, %v1287_v27 }
 0x149   :  { %v1294_v2 = vcombine.low %v1291_v36, %v1290_v35  ;;  %841 = vrot.lane.b32.xlu0 %v837_v32, %s2087_s0  ;;  %v1524_v39 = vpop.permute.xlu0 %1523  ;;  %v838_v12 = vcombine.high %v837_v32, %v837_v32  ;;  %v2393_v40 = vmax.f32 %v2303_v22, %v1064_v30 }
 0x14b   :  { %v1301_v41 = vrot.slane %v1294_v2, %v2117_v25  ;;  %v1526_v42 = vpop.permute.xlu1 %1525  ;;  %843 = vrot.lane.b32.xlu1 %v838_v12, %s2087_s0  ;;  %v1074_v43 = vrot.slane %v2393_v40, %v2117_v25 }
 0x14c   :  { %v1527_v44 = vsel %vm103_vm1, %v1524_v39, %v1526_v42  ;;  %v1528_v45 = vsel %vm103_vm1, %v1526_v42, %v1524_v39 }
 0x14d   :  { %v1531_v46 = vcombine.low %v1528_v45, %v1527_v44  ;;  %1078 = vrot.lane.b32.xlu0 %v1074_v43, %s2087_s0  ;;  %v1075_v47 = vcombine.high %v1074_v43, %v1074_v43  ;;  %v2405_v22 = vmax.f32 %v2308_v28, %v1301_v41  ;;  %v1761_v51 = vpop.permute.xlu0 %1760 }
 0x14f   :  { %v1538_v48 = vrot.slane %v1531_v46, %v2117_v25  ;;  %v1763_v52 = vpop.permute.xlu1 %1762  ;;  %1080 = vrot.lane.b32.xlu1 %v1075_v47, %s2087_s0  ;;  %v1311_v54 = vrot.slane %v2405_v22, %v2117_v25 }
 0x150   :  { %v1764_v55 = vsel %vm103_vm1, %v1761_v51, %v1763_v52  ;;  %v1765_v57 = vsel %vm103_vm1, %v1763_v52, %v1761_v51 }
 0x151   :  { %v1768_v60 = vcombine.low %v1765_v57, %v1764_v55  ;;  %1315 = vrot.lane.b32.xlu0 %v1311_v54, %s2087_s0  ;;  %v1312_v28 = vcombine.high %v1311_v54, %v1311_v54  ;;  %v2417_v61 = vmax.f32 %v2318_v34, %v1538_v48 }
 0x153   :  { %v1775_v62 = vrot.slane %v1768_v60, %v2117_v25  ;;  %1317 = vrot.lane.b32.xlu1 %v1312_v28, %s2087_s0  ;;  %v1548_v63 = vrot.slane %v2417_v61, %v2117_v25 }
 0x155   :  { %1552 = vrot.lane.b32.xlu0 %v1548_v63, %s2087_s0  ;;  %v1549_v0 = vcombine.high %v1548_v63, %v1548_v63  ;;  %v2425_v3 = vmax.f32 %v2325_v37, %v1775_v62 }
 0x157   :  { %1554 = vrot.lane.b32.xlu1 %v1549_v0, %s2087_s0  ;;  %v1785_v4 = vrot.slane %v2425_v3, %v2117_v25 }
 0x159   :  { %1789 = vrot.lane.b32.xlu0 %v1785_v4, %s2087_s0  ;;  %v1786_v34 = vcombine.high %v1785_v4, %v1785_v4 }
 0x15b   :  { %1791 = vrot.lane.b32.xlu1 %v1786_v34, %s2087_s0 }
 0x1af   :  { %v130_v6 = vpop.permute.xlu0 %129 }
 0x1b1   :  { %v132_v7 = vpop.permute.xlu1 %131 }
 0x1b2   :  { %v134_v8 = vsel %vm133_vm2, %v130_v6, %v132_v7  ;;  %v135_v37 = vsel %vm133_vm2, %v132_v7, %v130_v6 }
 0x1b3   :  { %v138_v9 = vcombine.low %v135_v37, %v134_v8  ;;  %v368_v10 = vpop.permute.xlu0 %367 }
 0x1b5   :  { %v145_v56 = vrot.slane %v138_v9, %v2117_v25  ;;  %v370_v13 = vpop.permute.xlu1 %369 }
 0x1b6   :  { %v371_v14 = vsel %vm133_vm2, %v368_v10, %v370_v13  ;;  %v372_v49 = vsel %vm133_vm2, %v370_v13, %v368_v10 }
 0x1b7   :  { %v147_v16 = vmax.f32 %v2346_v59, %v145_v56  ;;  %v375_v18 = vcombine.low %v372_v49, %v371_v14  ;;  %v605_v19 = vpop.permute.xlu0 %604 }
 0x1b9   :  { %v155_v20 = vrot.slane %v147_v16, %v2117_v25  ;;  %v382_v21 = vrot.slane %v375_v18, %v2117_v25  ;;  %v607_v23 = vpop.permute.xlu1 %606 }
 0x1ba   :  { %v608_v27 = vsel %vm133_vm2, %v605_v19, %v607_v23  ;;  %v609_v5 = vsel %vm133_vm2, %v607_v23, %v605_v19 }
 0x1bb   :  { %v156_v30 = vcombine.high %v155_v20, %v155_v20  ;;  %v384_v31 = vmax.f32 %v2357_v53, %v382_v21  ;;  %v612_v32 = vcombine.low %v609_v5, %v608_v27  ;;  %v842_v35 = vpop.permute.xlu0 %841 }
 0x1bd   :  { %v157_v36 = vcombine.low %v156_v30, %v155_v20  ;;  %v392_v59 = vrot.slane %v384_v31, %v2117_v25  ;;  %v619_v2 = vrot.slane %v612_v32, %v2117_v25  ;;  %v844_v39 = vpop.permute.xlu1 %843 }
 0x1be   :  { %v845_v12 = vsel %vm133_vm2, %v842_v35, %v844_v39  ;;  %v846_v41 = vsel %vm133_vm2, %v844_v39, %v842_v35 }
 0x1bf   :  { %v164_v42 = vrot.slane %v157_v36, %v2117_v25  ;;  %v393_v43 = vcombine.high %v392_v59, %v392_v59  ;;  %v621_v44 = vmax.f32 %v2369_v15, %v619_v2  ;;  %v849_v53 = vcombine.low %v846_v41, %v845_v12  ;;  %v1079_v45 = vpop.permute.xlu0 %1078 }
 0x1c1   :  { %v166_v46 = vmax.f32 %v147_v16, %v164_v42  ;;  %v394_v47 = vcombine.low %v393_v43, %v392_v59  ;;  %v629_v48 = vrot.slane %v621_v44, %v2117_v25  ;;  %v856_v51 = vrot.slane %v849_v53, %v2117_v25  ;;  %v1081_v52 = vpop.permute.xlu1 %1080 }
 0x1c2   :  { %v1082_v54 = vsel %vm133_vm2, %v1079_v45, %v1081_v52  ;;  %v1083_v55 = vsel %vm133_vm2, %v1081_v52, %v1079_v45 }
 0x1c3   :  { %v167_v57 = vsub.f32 %v2139_v50, %v166_v46  ;;  %v401_v60 = vrot.slane %v394_v47, %v2117_v25  ;;  %v630_v15 = vcombine.high %v629_v48, %v629_v48  ;;  %v858_v28 = vmax.f32 %v2381_v29, %v856_v51  ;;  %v1316_v62 = vpop.permute.xlu0 %1315 }
 0x1c4   :  { %v1086_v63 = vcombine.low %v1083_v55, %v1082_v54 }
 0x1c5   :  { %v168_v0 = vmul.f32 1.442695, %v167_v57  ;;  %v403_v4 = vmax.f32 %v384_v31, %v401_v60  ;;  %v631_v34 = vcombine.low %v630_v15, %v629_v48  ;;  %v866_v6 = vrot.slane %v858_v28, %v2117_v25  ;;  %v1318_v7 = vpop.permute.xlu1 %1317 }
 0x1c6   :  { %v1093_v8 = vrot.slane %v1086_v63, %v2117_v25  ;;  %v1319_v37 = vsel %vm133_vm2, %v1316_v62, %v1318_v7  ;;  %v1320_v50 = vsel %vm133_vm2, %v1318_v7, %v1316_v62 }
 0x1c7   :  { %1992 = vpow2.f32 %v168_v0  ;;  %v404_v9 = vsub.f32 %v2124_v33, %v403_v4  ;;  %v638_v29 = vrot.slane %v631_v34, %v2117_v25  ;;  %v867_v10 = vcombine.high %v866_v6, %v866_v6  ;;  %v1553_v56 = vpop.permute.xlu0 %1552 }
 0x1c8   :  { %v1095_v13 = vmax.f32 %v2393_v40, %v1093_v8  ;;  %v1323_v14 = vcombine.low %v1320_v50, %v1319_v37 }
 0x1c9   :  { %v405_v49 = vmul.f32 1.442695, %v404_v9  ;;  %v640_v16 = vmax.f32 %v621_v44, %v638_v29  ;;  %v868_v18 = vcombine.low %v867_v10, %v866_v6  ;;  %v1555_v19 = vpop.permute.xlu1 %1554 }
 0x1ca   :  { %v1103_v20 = vrot.slane %v1095_v13, %v2117_v25  ;;  %v1330_v21 = vrot.slane %v1323_v14, %v2117_v25  ;;  %v1556_v23 = vsel %vm133_vm2, %v1553_v56, %v1555_v19  ;;  %v1557_v33 = vsel %vm133_vm2, %v1555_v19, %v1553_v56 }
 0x1cb   :  { %1994 = vpow2.f32 %v405_v49  ;;  %v641_v27 = vsub.f32 %v2160_v1, %v640_v16  ;;  %v875_v40 = vrot.slane %v868_v18, %v2117_v25  ;;  %v1560_v5 = vcombine.low %v1557_v33, %v1556_v23  ;;  %v1790_v59 = vpop.permute.xlu0 %1789 }
 0x1cc   :  { %v1104_v30 = vcombine.high %v1103_v20, %v1103_v20  ;;  %v1332_v31 = vmax.f32 %v2405_v22, %v1330_v21 }
 0x1cd   :  { %v642_v32 = vmul.f32 1.442695, %v641_v27  ;;  %v877_v35 = vmax.f32 %v858_v28, %v875_v40  ;;  %v1567_v36 = vrot.slane %v1560_v5, %v2117_v25  ;;  %v1792_v2 = vpop.permute.xlu1 %1791 }
 0x1ce   :  { %v1105_v39 = vcombine.low %v1104_v30, %v1103_v20  ;;  %v1340_v12 = vrot.slane %v1332_v31, %v2117_v25  ;;  %v1793_v41 = vsel %vm133_vm2, %v1790_v59, %v1792_v2  ;;  %v1794_v1 = vsel %vm133_vm2, %v1792_v2, %v1790_v59 }
 0x1cf   :  { %1996 = vpow2.f32 %v642_v32  ;;  %v878_v42 = vsub.f32 %v2180_v24, %v877_v35  ;;  %v1569_v22 = vmax.f32 %v2417_v61, %v1567_v36  ;;  %v1797_v43 = vcombine.low %v1794_v1, %v1793_v41 }
 0x1d0   :  { %v1112_v44 = vrot.slane %v1105_v39, %v2117_v25  ;;  %v1341_v53 = vcombine.high %v1340_v12, %v1340_v12 }
 0x1d1   :  { %v879_v45 = vmul.f32 1.442695, %v878_v42  ;;  %v1577_v46 = vrot.slane %v1569_v22, %v2117_v25  ;;  %v1804_v47 = vrot.slane %v1797_v43, %v2117_v25 }
 0x1d2   :  { %v1114_v48 = vmax.f32 %v1095_v13, %v1112_v44  ;;  %v1342_v51 = vcombine.low %v1341_v53, %v1340_v12 }
 0x1d3   :  { %1998 = vpow2.f32 %v879_v45  ;;  %v1578_v52 = vcombine.high %v1577_v46, %v1577_v46  ;;  %v1806_v54 = vmax.f32 %v2425_v3, %v1804_v47 }
 0x1d4   :  { %v2497_v55 = vpop.eup %1992  ;;  %v1115_v24 = vsub.f32 %v2194_v38, %v1114_v48  ;;  %v1349_v61 = vrot.slane %v1342_v51, %v2117_v25 }
 0x1d5   :  { %v1579_v57 = vcombine.low %v1578_v52, %v1577_v46  ;;  %v1814_v60 = vrot.slane %v1806_v54, %v2117_v25  ;;  %v177_v15 = vrot.slane %v2497_v55, %v2117_v25 }
 0x1d6   :  { %v1116_v28 = vmul.f32 1.442695, %v1115_v24  ;;  %v1351_v62 = vmax.f32 %v1332_v31, %v1349_v61 }
 0x1d7   :  { %v1586_v63 = vrot.slane %v1579_v57, %v2117_v25  ;;  %v1815_v0 = vcombine.high %v1814_v60, %v1814_v60  ;;  %181 = vrot.lane.b32.xlu0 %v177_v15, %s2085_s7  ;;  %v178_v3 = vcombine.high %v177_v15, %v177_v15 }
 0x1d8   :  { %v2506_v4 = vpop.eup %1994  ;;  %2000 = vpow2.f32 %v1116_v28  ;;  %v1352_v38 = vsub.f32 %v2208_v58, %v1351_v62 }
 0x1d9   :  { %v1588_v34 = vmax.f32 %v1569_v22, %v1586_v63  ;;  %v1816_v6 = vcombine.low %v1815_v0, %v1814_v60  ;;  %183 = vrot.lane.b32.xlu1 %v178_v3, %s2085_s7  ;;  %v414_v7 = vrot.slane %v2506_v4, %v2117_v25 }
 0x1da   :  { %v1353_v8 = vmul.f32 1.442695, %v1352_v38 }
 0x1db   :  { %v1589_v37 = vsub.f32 %v2220_v11, %v1588_v34  ;;  %v1823_v50 = vrot.slane %v1816_v6, %v2117_v25  ;;  %418 = vrot.lane.b32.xlu0 %v414_v7, %s2085_s7  ;;  %v415_v9 = vcombine.high %v414_v7, %v414_v7 }
 0x1dc   :  { %v2515_v29 = vpop.eup %1996  ;;  %2002 = vpow2.f32 %v1353_v8 }
 0x1dd   :  { %v1590_v10 = vmul.f32 1.442695, %v1589_v37  ;;  %v1825_v58 = vmax.f32 %v1806_v54, %v1823_v50  ;;  %420 = vrot.lane.b32.xlu1 %v415_v9, %s2085_s7  ;;  %v651_v56 = vrot.slane %v2515_v29, %v2117_v25 }
 0x1df   :  { %2004 = vpow2.f32 %v1590_v10  ;;  %v1826_v13 = vsub.f32 %v2226_v17, %v1825_v58  ;;  %655 = vrot.lane.b32.xlu0 %v651_v56, %s2085_s7  ;;  %v652_v11 = vcombine.high %v651_v56, %v651_v56 }
 0x1e0   :  { %v2522_v14 = vpop.eup %1998 }
 0x1e1   :  { %v1827_v49 = vmul.f32 1.442695, %v1826_v13  ;;  %657 = vrot.lane.b32.xlu1 %v652_v11, %s2085_s7  ;;  %v888_v16 = vrot.slane %v2522_v14, %v2117_v25 }
 0x1e3   :  { %2006 = vpow2.f32 %v1827_v49  ;;  %892 = vrot.lane.b32.xlu0 %v888_v16, %s2085_s7  ;;  %v889_v18 = vcombine.high %v888_v16, %v888_v16 }
 0x1e5   :  { %v2528_v19 = vpop.eup %2000  ;;  %894 = vrot.lane.b32.xlu1 %v889_v18, %s2085_s7 }
 0x1e6   :  { %v1125_v17 = vrot.slane %v2528_v19, %v2117_v25 }
 0x1e8   :  { %1129 = vrot.lane.b32.xlu0 %v1125_v17, %s2085_s7  ;;  %v1126_v20 = vcombine.high %v1125_v17, %v1125_v17 }
 0x1e9   :  { %v2534_v21 = vpop.eup %2002 }
 0x1ea   :  { %1131 = vrot.lane.b32.xlu1 %v1126_v20, %s2085_s7  ;;  %v1362_v23 = vrot.slane %v2534_v21, %v2117_v25 }
 0x1ec   :  { %v2539_v33 = vpop.eup %2004  ;;  %1366 = vrot.lane.b32.xlu0 %v1362_v23, %s2085_s7  ;;  %v1363_v27 = vcombine.high %v1362_v23, %v1362_v23 }
 0x1ed   :  { %v1599_v40 = vrot.slane %v2539_v33, %v2117_v25 }
 0x1ee   :  { %1368 = vrot.lane.b32.xlu1 %v1363_v27, %s2085_s7 }
 0x1ef   :  { %v1600_v5 = vcombine.high %v1599_v40, %v1599_v40 }
 0x1f0   :  { %v2545_v30 = vpop.eup %2006  ;;  %1603 = vrot.lane.b32.xlu0 %v1599_v40, %s2085_s7 }
 0x1f1   :  { %v1836_v31 = vrot.slane %v2545_v30, %v2117_v25 }
 0x1f2   :  { %1605 = vrot.lane.b32.xlu1 %v1600_v5, %s2085_s7 }
 0x1f3   :  { %v1837_v32 = vcombine.high %v1836_v31, %v1836_v31 }
 0x1f4   :  { %1840 = vrot.lane.b32.xlu0 %v1836_v31, %s2085_s7 }
 0x1f6   :  { %1842 = vrot.lane.b32.xlu1 %v1837_v32, %s2085_s7 }
 0x249   :  { %v182_v35 = vpop.permute.xlu0 %181 }
 0x24b   :  { %v184_v36 = vpop.permute.xlu1 %183 }
 0x24c   :  { %v185_v59 = vsel %vm73_vm0, %v182_v35, %v184_v36  ;;  %v186_v2 = vsel %vm73_vm0, %v184_v36, %v182_v35 }
 0x24d   :  { %v189_v39 = vcombine.low %v186_v2, %v185_v59  ;;  %v419_v12 = vpop.permute.xlu0 %418 }
 0x24f   :  { %v196_v41 = vrot.slane %v189_v39, %v2117_v25  ;;  %v421_v1 = vpop.permute.xlu1 %420 }
 0x250   :  { %v422_v42 = vsel %vm73_vm0, %v419_v12, %v421_v1  ;;  %v423_v22 = vsel %vm73_vm0, %v421_v1, %v419_v12 }
 0x251   :  { %v426_v43 = vcombine.low %v423_v22, %v422_v42  ;;  %v656_v44 = vpop.permute.xlu0 %655  ;;  %v2563_v53 = vadd.f32 %v2497_v55, %v196_v41 }
 0x253   :  { %v433_v45 = vrot.slane %v426_v43, %v2117_v25  ;;  %v658_v46 = vpop.permute.xlu1 %657  ;;  %v206_v47 = vrot.slane %v2563_v53, %v2117_v25 }
 0x254   :  { %v659_v48 = vsel %vm73_vm0, %v656_v44, %v658_v46  ;;  %v660_v51 = vsel %vm73_vm0, %v658_v46, %v656_v44 }
 0x255   :  { %v663_v52 = vcombine.low %v660_v51, %v659_v48  ;;  %210 = vrot.lane.b32.xlu0 %v206_v47, %s2086_s21  ;;  %v893_v54 = vpop.permute.xlu0 %892  ;;  %v207_v24 = vcombine.high %v206_v47, %v206_v47  ;;  %v2574_v61 = vadd.f32 %v2506_v4, %v433_v45 }
 0x257   :  { %v670_v57 = vrot.slane %v663_v52, %v2117_v25  ;;  %v895_v60 = vpop.permute.xlu1 %894  ;;  %212 = vrot.lane.b32.xlu1 %v207_v24, %s2086_s21  ;;  %v443_v15 = vrot.slane %v2574_v61, %v2117_v25 }
 0x258   :  { %v896_v28 = vsel %vm73_vm0, %v893_v54, %v895_v60  ;;  %v897_v62 = vsel %vm73_vm0, %v895_v60, %v893_v54 }
 0x259   :  { %v900_v63 = vcombine.low %v897_v62, %v896_v28  ;;  %447 = vrot.lane.b32.xlu0 %v443_v15, %s2086_s21  ;;  %v444_v0 = vcombine.high %v443_v15, %v443_v15  ;;  %v2586_v3 = vadd.f32 %v2515_v29, %v670_v57 }
 0x25a   :  { %v1130_v38 = vpop.permute.xlu0 %1129 }
 0x25b   :  { %v907_v34 = vrot.slane %v900_v63, %v2117_v25  ;;  %449 = vrot.lane.b32.xlu1 %v444_v0, %s2086_s21  ;;  %v680_v6 = vrot.slane %v2586_v3, %v2117_v25 }
 0x25c   :  { %v1132_v7 = vpop.permute.xlu1 %1131 }
 0x25d   :  { %v1133_v8 = vsel %vm73_vm0, %v1130_v38, %v1132_v7  ;;  %v1134_v37 = vsel %vm73_vm0, %v1132_v7, %v1130_v38  ;;  %684 = vrot.lane.b32.xlu0 %v680_v6, %s2086_s21  ;;  %v681_v50 = vcombine.high %v680_v6, %v680_v6  ;;  %v2598_v9 = vadd.f32 %v2522_v14, %v907_v34 }
 0x25e   :  { %v1137_v10 = vcombine.low %v1134_v37, %v1133_v8  ;;  %v1367_v58 = vpop.permute.xlu0 %1366 }
 0x25f   :  { %686 = vrot.lane.b32.xlu1 %v681_v50, %s2086_s21  ;;  %v917_v56 = vrot.slane %v2598_v9, %v2117_v25 }
 0x260   :  { %v1144_v13 = vrot.slane %v1137_v10, %v2117_v25  ;;  %v1369_v11 = vpop.permute.xlu1 %1368 }
 0x261   :  { %v1370_v49 = vsel %vm73_vm0, %v1367_v58, %v1369_v11  ;;  %v1371_v16 = vsel %vm73_vm0, %v1369_v11, %v1367_v58  ;;  %921 = vrot.lane.b32.xlu0 %v917_v56, %s2086_s21  ;;  %v918_v18 = vcombine.high %v917_v56, %v917_v56 }
 0x262   :  { %v1374_v17 = vcombine.low %v1371_v16, %v1370_v49  ;;  %v1604_v20 = vpop.permute.xlu0 %1603  ;;  %v2610_v23 = vadd.f32 %v2528_v19, %v1144_v13 }
 0x263   :  { %923 = vrot.lane.b32.xlu1 %v918_v18, %s2086_s21 }
 0x264   :  { %v1381_v27 = vrot.slane %v1374_v17, %v2117_v25  ;;  %v1606_v40 = vpop.permute.xlu1 %1605  ;;  %v1154_v5 = vrot.slane %v2610_v23, %v2117_v25 }
 0x265   :  { %v1607_v31 = vsel %vm73_vm0, %v1604_v20, %v1606_v40  ;;  %v1608_v32 = vsel %vm73_vm0, %v1606_v40, %v1604_v20 }
 0x266   :  { %v1611_v35 = vcombine.low %v1608_v32, %v1607_v31  ;;  %1158 = vrot.lane.b32.xlu0 %v1154_v5, %s2086_s21  ;;  %v1155_v36 = vcombine.high %v1154_v5, %v1154_v5  ;;  %v2622_v59 = vadd.f32 %v2534_v21, %v1381_v27  ;;  %v1841_v39 = vpop.permute.xlu0 %1840 }
 0x268   :  { %v1618_v2 = vrot.slane %v1611_v35, %v2117_v25  ;;  %v1843_v12 = vpop.permute.xlu1 %1842  ;;  %1160 = vrot.lane.b32.xlu1 %v1155_v36, %s2086_s21  ;;  %v1391_v41 = vrot.slane %v2622_v59, %v2117_v25 }
 0x269   :  { %v1844_v1 = vsel %vm73_vm0, %v1841_v39, %v1843_v12  ;;  %v1845_v42 = vsel %vm73_vm0, %v1843_v12, %v1841_v39 }
 0x26a   :  { %v1848_v22 = vcombine.low %v1845_v42, %v1844_v1  ;;  %1395 = vrot.lane.b32.xlu0 %v1391_v41, %s2086_s21  ;;  %v1392_v43 = vcombine.high %v1391_v41, %v1391_v41  ;;  %v2634_v44 = vadd.f32 %v2539_v33, %v1618_v2 }
 0x26c   :  { %v1855_v45 = vrot.slane %v1848_v22, %v2117_v25  ;;  %1397 = vrot.lane.b32.xlu1 %v1392_v43, %s2086_s21  ;;  %v1628_v46 = vrot.slane %v2634_v44, %v2117_v25 }
 0x26e   :  { %1632 = vrot.lane.b32.xlu0 %v1628_v46, %s2086_s21  ;;  %v1629_v47 = vcombine.high %v1628_v46, %v1628_v46  ;;  %v2642_v48 = vadd.f32 %v2545_v30, %v1855_v45 }
 0x270   :  { %1634 = vrot.lane.b32.xlu1 %v1629_v47, %s2086_s21  ;;  %v1865_v51 = vrot.slane %v2642_v48, %v2117_v25 }
 0x272   :  { %1869 = vrot.lane.b32.xlu0 %v1865_v51, %s2086_s21  ;;  %v1866_v52 = vcombine.high %v1865_v51, %v1865_v51 }
 0x274   :  { %1871 = vrot.lane.b32.xlu1 %v1866_v52, %s2086_s21 }
 0x2c7   :  { %v211_v54 = vpop.permute.xlu0 %210 }
 0x2c9   :  { %v213_v24 = vpop.permute.xlu1 %212 }
 0x2ca   :  { %v214_v57 = vsel %vm103_vm1, %v211_v54, %v213_v24  ;;  %v215_v60 = vsel %vm103_vm1, %v213_v24, %v211_v54 }
 0x2cb   :  { %v218_v15 = vcombine.low %v215_v60, %v214_v57  ;;  %v448_v28 = vpop.permute.xlu0 %447 }
 0x2cd   :  { %v225_v62 = vrot.slane %v218_v15, %v2117_v25  ;;  %v450_v63 = vpop.permute.xlu1 %449 }
 0x2ce   :  { %v451_v0 = vsel %vm103_vm1, %v448_v28, %v450_v63  ;;  %v452_v38 = vsel %vm103_vm1, %v450_v63, %v448_v28 }
 0x2cf   :  { %v455_v34 = vcombine.low %v452_v38, %v451_v0  ;;  %v685_v6 = vpop.permute.xlu0 %684  ;;  %v2659_v7 = vadd.f32 %v225_v62, %v2563_v53 }
 0x2d1   :  { %v462_v8 = vrot.slane %v455_v34, %v2117_v25  ;;  %v687_v37 = vpop.permute.xlu1 %686  ;;  %v235_v50 = vrot.slane %v2659_v7, %v2117_v25 }
 0x2d2   :  { %v688_v10 = vsel %vm103_vm1, %v685_v6, %v687_v37  ;;  %v689_v58 = vsel %vm103_vm1, %v687_v37, %v685_v6 }
 0x2d3   :  { %v692_v56 = vcombine.low %v689_v58, %v688_v10  ;;  %239 = vrot.lane.b32.xlu0 %v235_v50, %s2087_s0  ;;  %v922_v13 = vpop.permute.xlu0 %921  ;;  %v236_v11 = vcombine.high %v235_v50, %v235_v50  ;;  %v2670_v53 = vadd.f32 %v462_v8, %v2574_v61 }
 0x2d5   :  { %v699_v49 = vrot.slane %v692_v56, %v2117_v25  ;;  %v924_v16 = vpop.permute.xlu1 %923  ;;  %241 = vrot.lane.b32.xlu1 %v236_v11, %s2087_s0  ;;  %v472_v18 = vrot.slane %v2670_v53, %v2117_v25 }
 0x2d6   :  { %v925_v17 = vsel %vm103_vm1, %v922_v13, %v924_v16  ;;  %v926_v20 = vsel %vm103_vm1, %v924_v16, %v922_v13 }
 0x2d7   :  { %v929_v27 = vcombine.low %v926_v20, %v925_v17  ;;  %476 = vrot.lane.b32.xlu0 %v472_v18, %s2087_s0  ;;  %v473_v40 = vcombine.high %v472_v18, %v472_v18  ;;  %v2682_v61 = vadd.f32 %v699_v49, %v2586_v3 }
 0x2d8   :  { %v1159_v5 = vpop.permute.xlu0 %1158 }
 0x2d9   :  { %v936_v31 = vrot.slane %v929_v27, %v2117_v25  ;;  %478 = vrot.lane.b32.xlu1 %v473_v40, %s2087_s0  ;;  %v709_v32 = vrot.slane %v2682_v61, %v2117_v25 }
 0x2da   :  { %v1161_v35 = vpop.permute.xlu1 %1160 }
 0x2db   :  { %v1162_v36 = vsel %vm103_vm1, %v1159_v5, %v1161_v35  ;;  %v1163_v2 = vsel %vm103_vm1, %v1161_v35, %v1159_v5  ;;  %713 = vrot.lane.b32.xlu0 %v709_v32, %s2087_s0  ;;  %v710_v39 = vcombine.high %v709_v32, %v709_v32  ;;  %v2694_v3 = vadd.f32 %v936_v31, %v2598_v9 }
 0x2dc   :  { %v1166_v12 = vcombine.low %v1163_v2, %v1162_v36  ;;  %v1396_v41 = vpop.permute.xlu0 %1395 }
 0x2dd   :  { %715 = vrot.lane.b32.xlu1 %v710_v39, %s2087_s0  ;;  %v946_v1 = vrot.slane %v2694_v3, %v2117_v25 }
 0x2de   :  { %v1173_v42 = vrot.slane %v1166_v12, %v2117_v25  ;;  %v1398_v22 = vpop.permute.xlu1 %1397 }
 0x2df   :  { %v1399_v43 = vsel %vm103_vm1, %v1396_v41, %v1398_v22  ;;  %v1400_v45 = vsel %vm103_vm1, %v1398_v22, %v1396_v41  ;;  %950 = vrot.lane.b32.xlu0 %v946_v1, %s2087_s0  ;;  %v947_v9 = vcombine.high %v946_v1, %v946_v1 }
 0x2e0   :  { %v1403_v46 = vcombine.low %v1400_v45, %v1399_v43  ;;  %v1633_v47 = vpop.permute.xlu0 %1632  ;;  %v2706_v51 = vadd.f32 %v1173_v42, %v2610_v23 }
 0x2e1   :  { %952 = vrot.lane.b32.xlu1 %v947_v9, %s2087_s0 }
 0x2e2   :  { %v1410_v52 = vrot.slane %v1403_v46, %v2117_v25  ;;  %v1635_v54 = vpop.permute.xlu1 %1634  ;;  %v1183_v24 = vrot.slane %v2706_v51, %v2117_v25 }
 0x2e3   :  { %v1636_v57 = vsel %vm103_vm1, %v1633_v47, %v1635_v54  ;;  %v1637_v60 = vsel %vm103_vm1, %v1635_v54, %v1633_v47 }
 0x2e4   :  { %v1640_v15 = vcombine.low %v1637_v60, %v1636_v57  ;;  %1187 = vrot.lane.b32.xlu0 %v1183_v24, %s2087_s0  ;;  %v1184_v28 = vcombine.high %v1183_v24, %v1183_v24  ;;  %v2718_v23 = vadd.f32 %v1410_v52, %v2622_v59  ;;  %v1870_v63 = vpop.permute.xlu0 %1869 }
 0x2e6   :  { %v1647_v62 = vrot.slane %v1640_v15, %v2117_v25  ;;  %v1872_v0 = vpop.permute.xlu1 %1871  ;;  %1189 = vrot.lane.b32.xlu1 %v1184_v28, %s2087_s0  ;;  %v1420_v38 = vrot.slane %v2718_v23, %v2117_v25 }
 0x2e7   :  { %v1873_v34 = vsel %vm103_vm1, %v1870_v63, %v1872_v0  ;;  %v1874_v6 = vsel %vm103_vm1, %v1872_v0, %v1870_v63 }
 0x2e8   :  { %v1877_v8 = vcombine.low %v1874_v6, %v1873_v34  ;;  %1424 = vrot.lane.b32.xlu0 %v1420_v38, %s2087_s0  ;;  %v1421_v59 = vcombine.high %v1420_v38, %v1420_v38  ;;  %v2730_v37 = vadd.f32 %v1647_v62, %v2634_v44 }
 0x2ea   :  { %v1884_v50 = vrot.slane %v1877_v8, %v2117_v25  ;;  %1426 = vrot.lane.b32.xlu1 %v1421_v59, %s2087_s0  ;;  %v1657_v10 = vrot.slane %v2730_v37, %v2117_v25 }
 0x2ec   :  { %1661 = vrot.lane.b32.xlu0 %v1657_v10, %s2087_s0  ;;  %v1658_v58 = vcombine.high %v1657_v10, %v1657_v10  ;;  %v2738_v56 = vadd.f32 %v1884_v50, %v2642_v48 }
 0x2ee   :  { %1663 = vrot.lane.b32.xlu1 %v1658_v58, %s2087_s0  ;;  %v1894_v13 = vrot.slane %v2738_v56, %v2117_v25 }
 0x2f0   :  { %1898 = vrot.lane.b32.xlu0 %v1894_v13, %s2087_s0  ;;  %v1895_v44 = vcombine.high %v1894_v13, %v1894_v13 }
 0x2f2   :  { %1900 = vrot.lane.b32.xlu1 %v1895_v44, %s2087_s0 }
 0x345   :  { %v240_v11 = vpop.permute.xlu0 %239 }
 0x347   :  { %v242_v49 = vpop.permute.xlu1 %241 }
 0x348   :  { %v243_v16 = vsel %vm133_vm2, %v240_v11, %v242_v49  ;;  %v244_v18 = vsel %vm133_vm2, %v242_v49, %v240_v11 }
 0x349   :  { %v247_v48 = vcombine.low %v244_v18, %v243_v16  ;;  %v477_v17 = vpop.permute.xlu0 %476 }
 0x34b   :  { %v254_v20 = vrot.slane %v247_v48, %v2117_v25  ;;  %v479_v27 = vpop.permute.xlu1 %478 }
 0x34c   :  { %v480_v40 = vsel %vm133_vm2, %v477_v17, %v479_v27  ;;  %v481_v5 = vsel %vm133_vm2, %v479_v27, %v477_v17 }
 0x34d   :  { %v256_v31 = vadd.f32 %v254_v20, %v2659_v7  ;;  %v484_v32 = vcombine.low %v481_v5, %v480_v40  ;;  %v714_v35 = vpop.permute.xlu0 %713 }
 0x34f   :  { %v264_v36 = vrot.slane %v256_v31, %v2117_v25  ;;  %v491_v2 = vrot.slane %v484_v32, %v2117_v25  ;;  %v716_v39 = vpop.permute.xlu1 %715 }
 0x350   :  { %v717_v12 = vsel %vm133_vm2, %v714_v35, %v716_v39  ;;  %v718_v41 = vsel %vm133_vm2, %v716_v39, %v714_v35 }
 0x351   :  { %v265_v1 = vcombine.high %v264_v36, %v264_v36  ;;  %v493_v42 = vadd.f32 %v491_v2, %v2670_v53  ;;  %v721_v22 = vcombine.low %v718_v41, %v717_v12  ;;  %v951_v43 = vpop.permute.xlu0 %950 }
 0x353   :  { %v266_v45 = vcombine.low %v265_v1, %v264_v36  ;;  %v501_v7 = vrot.slane %v493_v42, %v2117_v25  ;;  %v728_v9 = vrot.slane %v721_v22, %v2117_v25  ;;  %v953_v46 = vpop.permute.xlu1 %952 }
 0x354   :  { %v954_v47 = vsel %vm133_vm2, %v951_v43, %v953_v46  ;;  %v955_v52 = vsel %vm133_vm2, %v953_v46, %v951_v43 }
 0x355   :  { %v273_v54 = vrot.slane %v266_v45, %v2117_v25  ;;  %v502_v24 = vcombine.high %v501_v7, %v501_v7  ;;  %v730_v57 = vadd.f32 %v728_v9, %v2682_v61  ;;  %v958_v53 = vcombine.low %v955_v52, %v954_v47 }
 0x356   :  { %v1188_v60 = vpop.permute.xlu0 %1187 }
 0x357   :  { %v275_v15 = vadd.f32 %v273_v54, %v256_v31  ;;  %v503_v28 = vcombine.low %v502_v24, %v501_v7  ;;  %v738_v62 = vrot.slane %v730_v57, %v2117_v25  ;;  %v965_v63 = vrot.slane %v958_v53, %v2117_v25 }
 0x358   :  { %v1190_v0 = vpop.permute.xlu1 %1189 }
 0x359   :  { %2008 = vrcp.f32 %v275_v15  ;;  %v510_v38 = vrot.slane %v503_v28, %v2117_v25  ;;  %v739_v34 = vcombine.high %v738_v62, %v738_v62  ;;  %v967_v6 = vadd.f32 %v965_v63, %v2694_v3 }
 0x35a   :  { %v1191_v8 = vsel %vm133_vm2, %v1188_v60, %v1190_v0  ;;  %v1192_v61 = vsel %vm133_vm2, %v1190_v0, %v1188_v60  ;;  %v1425_v59 = vpop.permute.xlu0 %1424 }
 0x35b   :  { %v512_v50 = vadd.f32 %v510_v38, %v493_v42  ;;  %v740_v10 = vcombine.low %v739_v34, %v738_v62  ;;  %v975_v58 = vrot.slane %v967_v6, %v2117_v25  ;;  %v1195_v13 = vcombine.low %v1192_v61, %v1191_v8 }
 0x35c   :  { %v1427_v44 = vpop.permute.xlu1 %1426 }
 0x35d   :  { %2010 = vrcp.f32 %v512_v50  ;;  %v747_v11 = vrot.slane %v740_v10, %v2117_v25  ;;  %v976_v49 = vcombine.high %v975_v58, %v975_v58  ;;  %v1202_v16 = vrot.slane %v1195_v13, %v2117_v25 }
 0x35e   :  { %v1428_v3 = vsel %vm133_vm2, %v1425_v59, %v1427_v44  ;;  %v1429_v18 = vsel %vm133_vm2, %v1427_v44, %v1425_v59  ;;  %v1662_v40 = vpop.permute.xlu0 %1661 }
 0x35f   :  { %v749_v48 = vadd.f32 %v747_v11, %v730_v57  ;;  %v977_v17 = vcombine.low %v976_v49, %v975_v58  ;;  %v1204_v20 = vadd.f32 %v1202_v16, %v2706_v51  ;;  %v1432_v27 = vcombine.low %v1429_v18, %v1428_v3 }
 0x360   :  { %v1664_v5 = vpop.permute.xlu1 %1663 }
 0x361   :  { %2012 = vrcp.f32 %v749_v48  ;;  %v984_v31 = vrot.slane %v977_v17, %v2117_v25  ;;  %v1212_v32 = vrot.slane %v1204_v20, %v2117_v25  ;;  %v1439_v35 = vrot.slane %v1432_v27, %v2117_v25 }
 0x362   :  { %v1665_v36 = vsel %vm133_vm2, %v1662_v40, %v1664_v5  ;;  %v1666_v2 = vsel %vm133_vm2, %v1664_v5, %v1662_v40  ;;  %v1899_v45 = vpop.permute.xlu0 %1898 }
 0x363   :  { %v986_v39 = vadd.f32 %v984_v31, %v967_v6  ;;  %v1213_v12 = vcombine.high %v1212_v32, %v1212_v32  ;;  %v1441_v51 = vadd.f32 %v1439_v35, %v2718_v23  ;;  %v1669_v41 = vcombine.low %v1666_v2, %v1665_v36 }
 0x364   :  { %v1901_v1 = vpop.permute.xlu1 %1900 }
 0x365   :  { %2014 = vrcp.f32 %v986_v39  ;;  %v1214_v42 = vcombine.low %v1213_v12, %v1212_v32  ;;  %v1449_v22 = vrot.slane %v1441_v51, %v2117_v25  ;;  %v1676_v43 = vrot.slane %v1669_v41, %v2117_v25 }
 0x366   :  { %v2009_v7 = vpop.eup %2008  ;;  %v1902_v9 = vsel %vm133_vm2, %v1899_v45, %v1901_v1  ;;  %v1903_v46 = vsel %vm133_vm2, %v1901_v1, %v1899_v45 }
 0x367   :  { %v1221_v47 = vrot.slane %v1214_v42, %v2117_v25  ;;  %v1450_v52 = vcombine.high %v1449_v22, %v1449_v22  ;;  %v1678_v23 = vadd.f32 %v1676_v43, %v2730_v37  ;;  %v1906_v54 = vcombine.low %v1903_v46, %v1902_v9 }
 0x368   :  { %v277_v24 = vmul.f32 %v2009_v7, %v2497_v55 }
 0x369   :  { %v1223_v57 = vadd.f32 %v1221_v47, %v1204_v20  ;;  %v1451_v53 = vcombine.low %v1450_v52, %v1449_v22  ;;  %v1686_v60 = vrot.slane %v1678_v23, %v2117_v25  ;;  %v1913_v15 = vrot.slane %v1906_v54, %v2117_v25 }
 0x36a   :  { %v2011_v28 = vpop.eup %2010  ;;  %278 = vst [vmem:[#allocation7] sm:$0xf] %v277_v24 }
 0x36b   :  { %2016 = vrcp.f32 %v1223_v57  ;;  %v1458_v26 = vrot.slane %v1451_v53, %v2117_v25  ;;  %v1687_v62 = vcombine.high %v1686_v60, %v1686_v60  ;;  %v1915_v63 = vadd.f32 %v1913_v15, %v2738_v56 }
 0x36c   :  { %v514_v0 = vmul.f32 %v2011_v28, %v2506_v4 }
 0x36d   :  { %v1460_v37 = vadd.f32 %v1458_v26, %v1441_v51  ;;  %v1688_v38 = vcombine.low %v1687_v62, %v1686_v60  ;;  %v1923_v55 = vrot.slane %v1915_v63, %v2117_v25 }
 0x36e   :  { %v2013_v34 = vpop.eup %2012  ;;  %515 = vst [vmem:[#allocation7 + $0x4] sm:$0xf] %v514_v0 }
 0x36f   :  { %2018 = vrcp.f32 %v1460_v37  ;;  %v1695_v6 = vrot.slane %v1688_v38, %v2117_v25  ;;  %v1924_v8 = vcombine.high %v1923_v55, %v1923_v55  ;;  %v751_v61 = vmul.f32 %v2013_v34, %v2515_v29 }
 0x371   :  { %v1697_v59 = vadd.f32 %v1695_v6, %v1678_v23  ;;  %v1925_v50 = vcombine.low %v1924_v8, %v1923_v55  ;;  %752 = vst [vmem:[#allocation7 + $0x8] sm:$0xf] %v751_v61 }
 0x372   :  { %v2015_v10 = vpop.eup %2014 }
 0x373   :  { %2020 = vrcp.f32 %v1697_v59  ;;  %v1932_v56 = vrot.slane %v1925_v50, %v2117_v25  ;;  %v988_v4 = vmul.f32 %v2015_v10, %v2522_v14 }
 0x375   :  { %v1934_v58 = vadd.f32 %v1932_v56, %v1915_v63  ;;  %989 = vst [vmem:[#allocation7 + $0xc] sm:$0xf] %v988_v4 }
 0x377   :  { %2022 = vrcp.f32 %v1934_v58 }
 0x378   :  { %v2017_v13 = vpop.eup %2016 }
 0x379   :  { %v1225_v44 = vmul.f32 %v2017_v13, %v2528_v19 }
 0x37b   :  { %1226 = vst [vmem:[#allocation7 + $0x10] sm:$0xf] %v1225_v44 }
 0x37c   :  { %v2019_v11 = vpop.eup %2018 }
 0x37d   :  { %v1462_v49 = vmul.f32 %v2019_v11, %v2534_v21 }
 0x37f   :  { %1463 = vst [vmem:[#allocation7 + $0x14] sm:$0xf] %v1462_v49 }
 0x380   :  { %v2021_v29 = vpop.eup %2020 }
 0x381   :  { %v1699_v16 = vmul.f32 %v2021_v29, %v2539_v33 }
 0x383   :  { %1700 = vst [vmem:[#allocation7 + $0x18] sm:$0xf] %v1699_v16 }
 0x384   :  { %v2023_v25 = vpop.eup %2022 }
 0x385   :  { %v1936_v14 = vmul.f32 %v2023_v25, %v2545_v30 }
 0x387   :  { %1937 = vst [vmem:[#allocation7 + $0x1c] sm:$0xf] %v1936_v14 }
 0x388   :  { %2067 = shalt.err (!%p2064_p0)
}
 0x389   :  { %1947 = dma.vmem_to_hbm [thread:$0]  %s1945_s23, 512, %s2822_s2, [#allocation4]  }
 0x38a   :  { %2080 = dma.done.wait [#allocation4], 512  }
 0x38b   :  { %2081 = vsyncadd [#allocation4], 4294966784 }
 0x38c   :  { %1951 = vsyncpa [#allocation3], 1 }
 0x38d   :  { %1952 = vsyncpa [#allocation4], 1 }
 0x38e   :  { %1953 = vsyncpa [#allocation5], 1 }

</bundles_post_ra>
